<compile_context>
chip_gen: v6e
topology: v6e:2x2x1
jax: 0.10.0
libtpu: 0.0.40
codegen_flags: <defaults>
</compile_context>

<pallas_src>
import functools
import numpy as np
import jax
import jax.numpy as jnp
from jax.experimental import pallas as pl
from jax.experimental.pallas import tpu as pltpu

EPS = 1e-6
NEG_INF = -1e9


# ----------------------------------------------------------------------------
# In-kernel helpers
# ----------------------------------------------------------------------------
def _layernorm(x, gamma, beta):
    mean = jnp.mean(x, axis=-1, keepdims=True)
    var = jnp.mean((x - mean) ** 2, axis=-1, keepdims=True)
    return (x - mean) * jax.lax.rsqrt(var + EPS) * gamma + beta


# ----------------------------------------------------------------------------
# Single fused kernel: (emb + pos-enc + LN)  ->  n_layers x (self-attn + FFN)
# grid = (batch_blocks, n_layers); x is carried in VMEM scratch across layers.
# ----------------------------------------------------------------------------
def encoder_stack_kernel(n_head, d_k, d_v, d_model, scale_emb,
                         emb_ref, pos_ref, bias_ref, g0_ref, b0_ref,
                         wqkv_ref, wo_ref, g1_ref, bt1_ref,
                         w1_ref, bb1_ref, w2_ref, bb2_ref, g2_ref, bt2_ref,
                         o_ref, x_scr):
    li = pl.program_id(1)
    n_layers = pl.num_programs(1)
    Bb, L, D = x_scr.shape
    HK = n_head * d_k
    HV = n_head * d_v
    bf16 = jnp.bfloat16

    # --- layer 0: embedding scale + positional encoding + input LayerNorm ----
    @pl.when(li == 0)
    def _embed_posenc_ln():
        x0 = emb_ref[...]                                   # (Bb, L, D)
        if scale_emb:
            x0 = x0 * (d_model ** 0.5)
        x0 = x0 + pos_ref[...][None, :, :]                  # + (1, L, D)
        # dropout == identity (inference)
        x_scr[...] = _layernorm(x0, g0_ref[...], b0_ref[...])

    x = x_scr[...]                                          # (Bb, L, D) f32
    x2d = x.reshape(Bb * L, D)

    # --------------------------- self attention -----------------------------
    # one fused QKV projection: (Bb*L, D) @ (D, 2*HK + HV)
    qkv = jnp.dot(x2d.astype(bf16), wqkv_ref[0],
                  preferred_element_type=jnp.float32)       # (Bb*L, 2HK+HV) f32
    key_bias = bias_ref[...][:, None, :]                    # (Bb, 1, L) additive
    scale = 1.0 / (d_k ** 0.5)

    heads = []
    for h in range(n_head):                                 # static unroll
        qh = (qkv[:, h * d_k:(h + 1) * d_k] * scale).reshape(Bb, L, d_k).astype(bf16)
        kh = qkv[:, HK + h * d_k:HK + (h + 1) * d_k].reshape(Bb, L, d_k).astype(bf16)
        vh = qkv[:, 2 * HK + h * d_v:2 * HK + (h + 1) * d_v].reshape(Bb, L, d_v).astype(bf16)
        s = jnp.einsum('bqd,bkd->bqk', qh, kh,
                       preferred_element_type=jnp.float32)  # (Bb, L, L) f32
        s = s + key_bias                                    # masked keys -> -1e9
        s = s - jnp.max(s, axis=-1, keepdims=True)
        p = jnp.exp(s)
        p = p * pl.reciprocal(jnp.sum(p, axis=-1, keepdims=True), approx=True)
        heads.append(jnp.einsum('bqk,bkd->bqd', p.astype(bf16), vh,
                                preferred_element_type=jnp.float32))
    # concat heads -> single output projection
    attn = jnp.concatenate(heads, axis=-1).reshape(Bb * L, HV)
    attn = jnp.dot(attn.astype(bf16), wo_ref[0],
                   preferred_element_type=jnp.float32)      # (Bb*L, D) f32
    x = _layernorm((attn + x2d).reshape(Bb, L, D), g1_ref[0], bt1_ref[0])

    # ------------------------- position-wise FFN ----------------------------
    x2d = x.reshape(Bb * L, D)
    h1 = jnp.dot(x2d.astype(bf16), w1_ref[0],
                 preferred_element_type=jnp.float32) + bb1_ref[0]
    h1 = jnp.maximum(h1, 0.0)
    y = jnp.dot(h1.astype(bf16), w2_ref[0],
                preferred_element_type=jnp.float32) + bb2_ref[0]
    x = _layernorm((y + x2d).reshape(Bb, L, D), g2_ref[0], bt2_ref[0])

    x_scr[...] = x                                          # carry to next layer

    @pl.when(li == n_layers - 1)
    def _writeback():
        o_ref[...] = x


# ----------------------------------------------------------------------------
# Wrapper: stacks per-layer weights, builds compact mask bias, one pallas_call
# ----------------------------------------------------------------------------
def encoder_forward(params, src_seq, src_mask, n_head, d_k, d_v, d_model,
                    scale_emb=False):
    B, L = src_seq.shape
    D = d_model
    layers = params['layers']
    n_layers = len(layers)
    d_inner = layers[0]['w1'].shape[1]
    HK, HV = n_head * d_k, n_head * d_v
    W_QKV = 2 * HK + HV

    # ---- plain-JAX glue: embedding gather + compact additive key mask ------
    emb = params['emb'][src_seq]                                  # (B, L, D) f32
    pos = params['pos_table'][0, :L]                              # (L, D)
    key_bias = jnp.where(src_mask[:, 0, :], 0.0, NEG_INF).astype(jnp.float32)  # (B, L)

    # ---- stack per-layer weights; bf16 for MXU operands, f32 elsewhere -----
    bf16 = jnp.bfloat16
    wqkv = jnp.stack([jnp.concatenate([l['wq'], l['wk'], l['wv']], axis=1)
                      for l in layers]).astype(bf16)              # (nl, D, W_QKV)
    wo = jnp.stack([l['wo'] for l in layers]).astype(bf16)        # (nl, HV, D)
    g1 = jnp.stack([l['attn_ln_g'] for l in layers])              # (nl, 1, D)
    bt1 = jnp.stack([l['attn_ln_b'] for l in layers])
    w1 = jnp.stack([l['w1'] for l in layers]).astype(bf16)        # (nl, D, d_inner)
    bb1 = jnp.stack([l['b1'] for l in layers])                    # (nl, 1, d_inner)
    w2 = jnp.stack([l['w2'] for l in layers]).astype(bf16)        # (nl, d_inner, D)
    bb2 = jnp.stack([l['b2'] for l in layers])                    # (nl, 1, D)
    g2 = jnp.stack([l['ffn_ln_g'] for l in layers])
    bt2 = jnp.stack([l['ffn_ln_b'] for l in layers])

    # Batch block: whole batch per step at these small sizes; for large B pick
    # Bb = 4..8 (with B % Bb == 0) to keep several batch rows per MXU matmul.
    Bb = B
    grid = (B // Bb, n_layers)

    const2 = lambda bi, li: (0, 0)
    per_batch = lambda bi, li: (bi, 0, 0)
    per_layer = lambda bi, li: (li, 0, 0)

    kernel = functools.partial(encoder_stack_kernel,
                               n_head, d_k, d_v, d_model, scale_emb)
    return pl.pallas_call(
        kernel,
        out_shape=jax.ShapeDtypeStruct((B, L, D), jnp.float32),
        grid=grid,
        in_specs=[
            pl.BlockSpec((Bb, L, D), per_batch),                  # emb
            pl.BlockSpec((L, D), const2),                         # pos table slice
            pl.BlockSpec((Bb, L), lambda bi, li: (bi, 0)),        # key bias
            pl.BlockSpec((1, D), const2),                         # input LN gamma
            pl.BlockSpec((1, D), const2),                         # input LN beta
            pl.BlockSpec((1, D, W_QKV), per_layer),               # fused Wq|Wk|Wv
            pl.BlockSpec((1, HV, D), per_layer),                  # Wo
            pl.BlockSpec((1, 1, D), per_layer),                   # attn LN gamma
            pl.BlockSpec((1, 1, D), per_layer),                   # attn LN beta
            pl.BlockSpec((1, D, d_inner), per_layer),             # W1
            pl.BlockSpec((1, 1, d_inner), per_layer),             # b1
            pl.BlockSpec((1, d_inner, D), per_layer),             # W2
            pl.BlockSpec((1, 1, D), per_layer),                   # b2
            pl.BlockSpec((1, 1, D), per_layer),                   # ffn LN gamma
            pl.BlockSpec((1, 1, D), per_layer),                   # ffn LN beta
        ],
        out_specs=pl.BlockSpec((Bb, L, D), per_batch),
        scratch_shapes=[pltpu.VMEM((Bb, L, D), jnp.float32)],     # resident x
        compiler_params=pltpu.CompilerParams(
            dimension_semantics=("parallel", "arbitrary")),       # batch || , layer seq
    )(emb, pos, key_bias, params['ln_g'], params['ln_b'],
      wqkv, wo, g1, bt1, w1, bb1, w2, bb2, g2, bt2)


# ----------------------------------------------------------------------------
# Parameter construction (deterministic, synthetic)
# ----------------------------------------------------------------------------
def sinusoid_table(n_position, d_hid):
    def angle_vec(pos):
        return [pos / np.power(10000, 2 * (j // 2) / d_hid) for j in range(d_hid)]
    tab = np.array([angle_vec(p) for p in range(n_position)])
    tab[:, 0::2] = np.sin(tab[:, 0::2])
    tab[:, 1::2] = np.cos(tab[:, 1::2])
    return jnp.asarray(tab, dtype=jnp.float32)[None]              # (1, n_pos, d_hid)


def init_encoder_params(key, n_src_vocab, d_word_vec, n_layers, n_head,
                        d_k, d_v, d_model, d_inner, pad_idx, n_position):
    def nrm(k, shape, scale=0.05):
        return jax.random.normal(k, shape, jnp.float32) * scale

    keys = jax.random.split(key, 1 + n_layers)
    emb = nrm(keys[0], (n_src_vocab, d_word_vec), 0.5)
    emb = emb.at[pad_idx].set(0.0)                                # padding_idx row = 0

    params = {
        'emb': emb,
        'pos_table': sinusoid_table(n_position, d_word_vec),
        'ln_g': jnp.ones((1, d_model), jnp.float32),
        'ln_b': jnp.zeros((1, d_model), jnp.float32),
        'layers': [],
    }
    for li in range(n_layers):
        lk = jax.random.split(keys[1 + li], 6)
        params['layers'].append({
            'wq': nrm(lk[0], (d_model, n_head * d_k)),
            'wk': nrm(lk[1], (d_model, n_head * d_k)),
            'wv': nrm(lk[2], (d_model, n_head * d_v)),
            'wo': nrm(lk[3], (n_head * d_v, d_model)),
            'attn_ln_g': jnp.ones((1, d_model), jnp.float32),
            'attn_ln_b': jnp.zeros((1, d_model), jnp.float32),
            'w1': nrm(lk[4], (d_model, d_inner)),
            'b1': jnp.zeros((1, d_inner), jnp.float32),
            'w2': nrm(lk[5], (d_inner, d_model)),
            'b2': jnp.zeros((1, d_model), jnp.float32),
            'ffn_ln_g': jnp.ones((1, d_model), jnp.float32),
            'ffn_ln_b': jnp.zeros((1, d_model), jnp.float32),
        })
    return params


# ----------------------------------------------------------------------------
# Pure-JAX reference (f32) for numerical sanity check
# ----------------------------------------------------------------------------
def _ref_ln(x, g, b):
    m = jnp.mean(x, axis=-1, keepdims=True)
    v = jnp.mean((x - m) ** 2, axis=-1, keepdims=True)
    return (x - m) / jnp.sqrt(v + EPS) * g + b


def encoder_forward_ref(params, src_seq, src_mask, n_head, d_k, d_v, d_model,
                        scale_emb=False):
    B, L = src_seq.shape
    x = params['emb'][src_seq]
    if scale_emb:
        x = x * d_model ** 0.5
    x = _ref_ln(x + params['pos_table'][:, :L], params['ln_g'], params['ln_b'])
    for l in params['layers']:
        q = (x @ l['wq']).reshape(B, L, n_head, d_k).transpose(0, 2, 1, 3)
        k = (x @ l['wk']).reshape(B, L, n_head, d_k).transpose(0, 2, 1, 3)
        v = (x @ l['wv']).reshape(B, L, n_head, d_v).transpose(0, 2, 1, 3)
        s = (q / d_k ** 0.5) @ k.transpose(0, 1, 3, 2)
        s = jnp.where(src_mask[:, None, :, :], s, NEG_INF)
        p = jax.nn.softmax(s, axis=-1)
        o = (p @ v).transpose(0, 2, 1, 3).reshape(B, L, n_head * d_v)
        x = _ref_ln(o @ l['wo'] + x, l['attn_ln_g'], l['attn_ln_b'])
        h = jnp.maximum(x @ l['w1'] + l['b1'], 0.0)
        x = _ref_ln(h @ l['w2'] + l['b2'] + x, l['ffn_ln_g'], l['ffn_ln_b'])
    return x


# ----------------------------------------------------------------------------
if __name__ == "__main__":
    B, L = 2, 8
    n_src_vocab, d_word_vec, d_model = 50, 32, 32
    n_layers, n_head, d_k, d_v, d_inner = 2, 4, 8, 8, 64
    pad_idx, n_position = 0, 200

    key = jax.random.PRNGKey(0)
    k_par, k_src = jax.random.split(key)

    params = init_encoder_params(k_par, n_src_vocab, d_word_vec, n_layers,
                                 n_head, d_k, d_v, d_model, d_inner,
                                 pad_idx, n_position)

    src_seq = jax.random.randint(k_src, (B, L), 0, n_src_vocab)
    src_mask = (src_seq != pad_idx)[:, None, :]                   # (B, 1, L) pad mask

    out = encoder_forward(params, src_seq, src_mask, n_head, d_k, d_v,
                          d_model, scale_emb=False)
    out = jax.block_until_ready(out)

    ref = encoder_forward_ref(params, src_seq, src_mask, n_head, d_k, d_v,
                              d_model, scale_emb=False)
    np.testing.assert_allclose(np.asarray(out), np.asarray(ref),
                               rtol=5e-2, atol=5e-2)
    assert out.shape == (B, L, d_model)
    print("KERNEL_OK")
</pallas_src>

<mosaic_0001>
module attributes {stable_mosaic.version = 11 : i64} {
  func.func @encoder_stack_kernel(%arg0: i32, %arg1: i32, %arg2: memref<2x8x32xf32, #tpu.memory_space<vmem>>, %arg3: memref<8x32xf32, #tpu.memory_space<vmem>>, %arg4: memref<2x8xf32, #tpu.memory_space<vmem>>, %arg5: memref<1x32xf32, #tpu.memory_space<vmem>>, %arg6: memref<1x32xf32, #tpu.memory_space<vmem>>, %arg7: memref<1x32x96xbf16, #tpu.memory_space<vmem>>, %arg8: memref<1x32x32xbf16, #tpu.memory_space<vmem>>, %arg9: memref<1x1x32xf32, #tpu.memory_space<vmem>>, %arg10: memref<1x1x32xf32, #tpu.memory_space<vmem>>, %arg11: memref<1x32x64xbf16, #tpu.memory_space<vmem>>, %arg12: memref<1x1x64xf32, #tpu.memory_space<vmem>>, %arg13: memref<1x64x32xbf16, #tpu.memory_space<vmem>>, %arg14: memref<1x1x32xf32, #tpu.memory_space<vmem>>, %arg15: memref<1x1x32xf32, #tpu.memory_space<vmem>>, %arg16: memref<1x1x32xf32, #tpu.memory_space<vmem>>, %arg17: memref<2x8x32xf32, #tpu.memory_space<vmem>>, %arg18: memref<2x8x32xf32, #tpu.memory_space<vmem>>) attributes {dimension_semantics = [#tpu.dimension_semantics<parallel>, #tpu.dimension_semantics<arbitrary>], iteration_bounds = array<i64: 1, 2>, scalar_prefetch = 0 : i64, scratch_operands = 1 : i64, tpu.core_type = #tpu.core_type<tc>, window_params = [{transform_indices = @transform_0, window_bounds = array<i64: 2, 8, 32>}, {pipeline_mode = #tpu.pipeline_mode<synchronous>, transform_indices = @transform_1, window_bounds = array<i64: 8, 32>}, {transform_indices = @transform_2, window_bounds = array<i64: 2, 8>}, {pipeline_mode = #tpu.pipeline_mode<synchronous>, transform_indices = @transform_3, window_bounds = array<i64: 1, 32>}, {pipeline_mode = #tpu.pipeline_mode<synchronous>, transform_indices = @transform_4, window_bounds = array<i64: 1, 32>}, {transform_indices = @transform_5, window_bounds = array<i64: 1, 32, 96>}, {transform_indices = @transform_6, window_bounds = array<i64: 1, 32, 32>}, {transform_indices = @transform_7, window_bounds = array<i64: 1, 1, 32>}, {transform_indices = @transform_8, window_bounds = array<i64: 1, 1, 32>}, {transform_indices = @transform_9, window_bounds = array<i64: 1, 32, 64>}, {transform_indices = @transform_10, window_bounds = array<i64: 1, 1, 64>}, {transform_indices = @transform_11, window_bounds = array<i64: 1, 64, 32>}, {transform_indices = @transform_12, window_bounds = array<i64: 1, 1, 32>}, {transform_indices = @transform_13, window_bounds = array<i64: 1, 1, 32>}, {transform_indices = @transform_14, window_bounds = array<i64: 1, 1, 32>}, {transform_indices = @transform_15, window_bounds = array<i64: 2, 8, 32>}]} {
    %c0_i32 = arith.constant 0 : i32
    %0 = arith.cmpi eq, %arg1, %c0_i32 : i32
    %1 = arith.extui %0 : i1 to i32
    %c0_i32_0 = arith.constant 0 : i32
    %2 = arith.cmpi ne, %1, %c0_i32_0 : i32
    scf.if %2 {
      %c0_73 = arith.constant 0 : index
      %c0_74 = arith.constant 0 : index
      %c0_75 = arith.constant 0 : index
      %204 = vector.load %arg2[%c0_73, %c0_74, %c0_75] : memref<2x8x32xf32, #tpu.memory_space<vmem>>, vector<2x8x32xf32>
      %c0_76 = arith.constant 0 : index
      %c0_77 = arith.constant 0 : index
      %205 = vector.load %arg3[%c0_76, %c0_77] : memref<8x32xf32, #tpu.memory_space<vmem>>, vector<8x32xf32>
      %206 = vector.shape_cast %205 : vector<8x32xf32> to vector<1x8x32xf32>
      %207 = vector.broadcast %206 : vector<1x8x32xf32> to vector<2x8x32xf32>
      %208 = arith.addf %204, %207 : vector<2x8x32xf32>
      %c0_78 = arith.constant 0 : index
      %c0_79 = arith.constant 0 : index
      %209 = vector.load %arg5[%c0_78, %c0_79] : memref<1x32xf32, #tpu.memory_space<vmem>>, vector<1x32xf32>
      %c0_80 = arith.constant 0 : index
      %c0_81 = arith.constant 0 : index
      %210 = vector.load %arg6[%c0_80, %c0_81] : memref<1x32xf32, #tpu.memory_space<vmem>>, vector<1x32xf32>
      %cst_82 = arith.constant dense<0.000000e+00> : vector<2x8xf32>
      %211 = vector.multi_reduction <add>, %208, %cst_82 [2] : vector<2x8x32xf32> to vector<2x8xf32>
      %212 = vector.shape_cast %211 : vector<2x8xf32> to vector<2x8x1xf32>
      %cst_83 = arith.constant 3.200000e+01 : f32
      %213 = vector.broadcast %cst_83 : f32 to vector<2x8x1xf32>
      %214 = arith.divf %212, %213 : vector<2x8x1xf32>
      %215 = vector.broadcast %214 : vector<2x8x1xf32> to vector<2x8x32xf32>
      %216 = arith.subf %208, %215 : vector<2x8x32xf32>
      %217 = arith.mulf %216, %216 : vector<2x8x32xf32>
      %cst_84 = arith.constant dense<0.000000e+00> : vector<2x8xf32>
      %218 = vector.multi_reduction <add>, %217, %cst_84 [2] : vector<2x8x32xf32> to vector<2x8xf32>
      %219 = vector.shape_cast %218 : vector<2x8xf32> to vector<2x8x1xf32>
      %cst_85 = arith.constant 3.200000e+01 : f32
      %220 = vector.broadcast %cst_85 : f32 to vector<2x8x1xf32>
      %221 = arith.divf %219, %220 : vector<2x8x1xf32>
      %222 = vector.broadcast %214 : vector<2x8x1xf32> to vector<2x8x32xf32>
      %223 = arith.subf %208, %222 : vector<2x8x32xf32>
      %cst_86 = arith.constant 9.99999997E-7 : f32
      %224 = vector.broadcast %cst_86 : f32 to vector<2x8x1xf32>
      %225 = arith.addf %221, %224 : vector<2x8x1xf32>
      %226 = math.rsqrt %225 : vector<2x8x1xf32>
      %227 = vector.broadcast %226 : vector<2x8x1xf32> to vector<2x8x32xf32>
      %228 = arith.mulf %223, %227 : vector<2x8x32xf32>
      %229 = vector.shape_cast %209 : vector<1x32xf32> to vector<1x1x32xf32>
      %230 = vector.broadcast %229 : vector<1x1x32xf32> to vector<2x8x32xf32>
      %231 = arith.mulf %228, %230 : vector<2x8x32xf32>
      %232 = vector.shape_cast %210 : vector<1x32xf32> to vector<1x1x32xf32>
      %233 = vector.broadcast %232 : vector<1x1x32xf32> to vector<2x8x32xf32>
      %234 = arith.addf %231, %233 : vector<2x8x32xf32>
      %c0_87 = arith.constant 0 : index
      %c0_88 = arith.constant 0 : index
      %c0_89 = arith.constant 0 : index
      %235 = vector.load %arg18[%c0_87, %c0_88, %c0_89] : memref<2x8x32xf32, #tpu.memory_space<vmem>>, vector<2x8x32xf32>
      tpu.vector_store %arg18[%c0_87, %c0_88, %c0_89], %234 {strides = array<i32>} : memref<2x8x32xf32, #tpu.memory_space<vmem>>, vector<2x8x32xf32>,
    } else {
    }
    %c0 = arith.constant 0 : index
    %c0_1 = arith.constant 0 : index
    %c0_2 = arith.constant 0 : index
    %3 = vector.load %arg18[%c0, %c0_1, %c0_2] : memref<2x8x32xf32, #tpu.memory_space<vmem>>, vector<2x8x32xf32>
    %4 = vector.shape_cast %3 : vector<2x8x32xf32> to vector<16x32xf32>
    %5 = arith.truncf %4 : vector<16x32xf32> to vector<16x32xbf16>
    %c0_3 = arith.constant 0 : index
    %c0_4 = arith.constant 0 : index
    %c0_5 = arith.constant 0 : index
    %6 = vector.load %arg7[%c0_3, %c0_4, %c0_5] : memref<1x32x96xbf16, #tpu.memory_space<vmem>>, vector<1x32x96xbf16>
    %7 = vector.shape_cast %6 : vector<1x32x96xbf16> to vector<32x96xbf16>
    %cst = arith.constant dense<0.000000e+00> : vector<16x96xf32>
    %8 = tpu.matmul %5, %7, %cst {dimension_numbers = #tpu.dot_dimension_numbers<[1], [0], [0], [1], [0, 0, 1, 1], [], []>} : vector<16x32xbf16>, vector<32x96xbf16>, vector<16x96xf32> -> vector<16x96xf32>
    %c0_6 = arith.constant 0 : index
    %c0_7 = arith.constant 0 : index
    %9 = vector.load %arg4[%c0_6, %c0_7] : memref<2x8xf32, #tpu.memory_space<vmem>>, vector<2x8xf32>
    %10 = vector.shape_cast %9 : vector<2x8xf32> to vector<2x1x8xf32>
    %11 = vector.extract_strided_slice %8 {offsets = [0, 0], sizes = [16, 8], strides = [1, 1]} : vector<16x96xf32> to vector<16x8xf32>
    %cst_8 = arith.constant 0.353553385 : f32
    %12 = vector.broadcast %cst_8 : f32 to vector<16x8xf32>
    %13 = arith.mulf %11, %12 : vector<16x8xf32>
    %14 = vector.shape_cast %13 : vector<16x8xf32> to vector<2x8x8xf32>
    %15 = arith.truncf %14 : vector<2x8x8xf32> to vector<2x8x8xbf16>
    %16 = vector.extract_strided_slice %8 {offsets = [0, 32], sizes = [16, 8], strides = [1, 1]} : vector<16x96xf32> to vector<16x8xf32>
    %17 = vector.shape_cast %16 : vector<16x8xf32> to vector<2x8x8xf32>
    %18 = arith.truncf %17 : vector<2x8x8xf32> to vector<2x8x8xbf16>
    %19 = vector.extract_strided_slice %8 {offsets = [0, 64], sizes = [16, 8], strides = [1, 1]} : vector<16x96xf32> to vector<16x8xf32>
    %20 = vector.shape_cast %19 : vector<16x8xf32> to vector<2x8x8xf32>
    %21 = arith.truncf %20 : vector<2x8x8xf32> to vector<2x8x8xbf16>
    "tpu.trace_start"() <{level = 10 : i32, message = "bqd,bkd->bqk"}> : () -> ()
    %cst_9 = arith.constant dense<0.000000e+00> : vector<2x8x8xf32>
    %22 = tpu.matmul %15, %18, %cst_9 {dimension_numbers = #tpu.dot_dimension_numbers<[2], [2], [1], [1], [0, 0, 0, 1, 1, 1], [0], [0]>} : vector<2x8x8xbf16>, vector<2x8x8xbf16>, vector<2x8x8xf32> -> vector<2x8x8xf32>
    "tpu.trace_stop"() : () -> ()
    %23 = vector.broadcast %10 : vector<2x1x8xf32> to vector<2x8x8xf32>
    %24 = arith.addf %22, %23 : vector<2x8x8xf32>
    %cst_10 = arith.constant dense<0xFF800000> : vector<2x8xf32>
    %25 = vector.multi_reduction <maximumf>, %24, %cst_10 [2] : vector<2x8x8xf32> to vector<2x8xf32>
    %26 = vector.shape_cast %25 : vector<2x8xf32> to vector<2x8x1xf32>
    %27 = vector.broadcast %26 : vector<2x8x1xf32> to vector<2x8x8xf32>
    %28 = arith.subf %24, %27 : vector<2x8x8xf32>
    %29 = math.exp %28 : vector<2x8x8xf32>
    %cst_11 = arith.constant dense<0.000000e+00> : vector<2x8xf32>
    %30 = vector.multi_reduction <add>, %29, %cst_11 [2] : vector<2x8x8xf32> to vector<2x8xf32>
    %31 = vector.shape_cast %30 : vector<2x8xf32> to vector<2x8x1xf32>
    %32 = tpu.reciprocal %31 {approx = true} : vector<2x8x1xf32> -> vector<2x8x1xf32>
    %33 = vector.broadcast %32 : vector<2x8x1xf32> to vector<2x8x8xf32>
    %34 = arith.mulf %29, %33 : vector<2x8x8xf32>
    %35 = arith.truncf %34 : vector<2x8x8xf32> to vector<2x8x8xbf16>
    "tpu.trace_start"() <{level = 10 : i32, message = "bqk,bkd->bqd"}> : () -> ()
    %cst_12 = arith.constant dense<0.000000e+00> : vector<2x8x8xf32>
    %36 = tpu.matmul %35, %21, %cst_12 {dimension_numbers = #tpu.dot_dimension_numbers<[2], [1], [1], [2], [0, 0, 0, 1, 1, 2], [0], [0]>} : vector<2x8x8xbf16>, vector<2x8x8xbf16>, vector<2x8x8xf32> -> vector<2x8x8xf32>
    "tpu.trace_stop"() : () -> ()
    %37 = vector.extract_strided_slice %8 {offsets = [0, 8], sizes = [16, 8], strides = [1, 1]} : vector<16x96xf32> to vector<16x8xf32>
    %cst_13 = arith.constant 0.353553385 : f32
    %38 = vector.broadcast %cst_13 : f32 to vector<16x8xf32>
    %39 = arith.mulf %37, %38 : vector<16x8xf32>
    %40 = vector.shape_cast %39 : vector<16x8xf32> to vector<2x8x8xf32>
    %41 = arith.truncf %40 : vector<2x8x8xf32> to vector<2x8x8xbf16>
    %42 = vector.extract_strided_slice %8 {offsets = [0, 40], sizes = [16, 8], strides = [1, 1]} : vector<16x96xf32> to vector<16x8xf32>
    %43 = vector.shape_cast %42 : vector<16x8xf32> to vector<2x8x8xf32>
    %44 = arith.truncf %43 : vector<2x8x8xf32> to vector<2x8x8xbf16>
    %45 = vector.extract_strided_slice %8 {offsets = [0, 72], sizes = [16, 8], strides = [1, 1]} : vector<16x96xf32> to vector<16x8xf32>
    %46 = vector.shape_cast %45 : vector<16x8xf32> to vector<2x8x8xf32>
    %47 = arith.truncf %46 : vector<2x8x8xf32> to vector<2x8x8xbf16>
    "tpu.trace_start"() <{level = 10 : i32, message = "bqd,bkd->bqk"}> : () -> ()
    %cst_14 = arith.constant dense<0.000000e+00> : vector<2x8x8xf32>
    %48 = tpu.matmul %41, %44, %cst_14 {dimension_numbers = #tpu.dot_dimension_numbers<[2], [2], [1], [1], [0, 0, 0, 1, 1, 1], [0], [0]>} : vector<2x8x8xbf16>, vector<2x8x8xbf16>, vector<2x8x8xf32> -> vector<2x8x8xf32>
    "tpu.trace_stop"() : () -> ()
    %49 = vector.broadcast %10 : vector<2x1x8xf32> to vector<2x8x8xf32>
    %50 = arith.addf %48, %49 : vector<2x8x8xf32>
    %cst_15 = arith.constant dense<0xFF800000> : vector<2x8xf32>
    %51 = vector.multi_reduction <maximumf>, %50, %cst_15 [2] : vector<2x8x8xf32> to vector<2x8xf32>
    %52 = vector.shape_cast %51 : vector<2x8xf32> to vector<2x8x1xf32>
    %53 = vector.broadcast %52 : vector<2x8x1xf32> to vector<2x8x8xf32>
    %54 = arith.subf %50, %53 : vector<2x8x8xf32>
    %55 = math.exp %54 : vector<2x8x8xf32>
    %cst_16 = arith.constant dense<0.000000e+00> : vector<2x8xf32>
    %56 = vector.multi_reduction <add>, %55, %cst_16 [2] : vector<2x8x8xf32> to vector<2x8xf32>
    %57 = vector.shape_cast %56 : vector<2x8xf32> to vector<2x8x1xf32>
    %58 = tpu.reciprocal %57 {approx = true} : vector<2x8x1xf32> -> vector<2x8x1xf32>
    %59 = vector.broadcast %58 : vector<2x8x1xf32> to vector<2x8x8xf32>
    %60 = arith.mulf %55, %59 : vector<2x8x8xf32>
    %61 = arith.truncf %60 : vector<2x8x8xf32> to vector<2x8x8xbf16>
    "tpu.trace_start"() <{level = 10 : i32, message = "bqk,bkd->bqd"}> : () -> ()
    %cst_17 = arith.constant dense<0.000000e+00> : vector<2x8x8xf32>
    %62 = tpu.matmul %61, %47, %cst_17 {dimension_numbers = #tpu.dot_dimension_numbers<[2], [1], [1], [2], [0, 0, 0, 1, 1, 2], [0], [0]>} : vector<2x8x8xbf16>, vector<2x8x8xbf16>, vector<2x8x8xf32> -> vector<2x8x8xf32>
    "tpu.trace_stop"() : () -> ()
    %63 = vector.extract_strided_slice %8 {offsets = [0, 16], sizes = [16, 8], strides = [1, 1]} : vector<16x96xf32> to vector<16x8xf32>
    %cst_18 = arith.constant 0.353553385 : f32
    %64 = vector.broadcast %cst_18 : f32 to vector<16x8xf32>
    %65 = arith.mulf %63, %64 : vector<16x8xf32>
    %66 = vector.shape_cast %65 : vector<16x8xf32> to vector<2x8x8xf32>
    %67 = arith.truncf %66 : vector<2x8x8xf32> to vector<2x8x8xbf16>
    %68 = vector.extract_strided_slice %8 {offsets = [0, 48], sizes = [16, 8], strides = [1, 1]} : vector<16x96xf32> to vector<16x8xf32>
    %69 = vector.shape_cast %68 : vector<16x8xf32> to vector<2x8x8xf32>
    %70 = arith.truncf %69 : vector<2x8x8xf32> to vector<2x8x8xbf16>
    %71 = vector.extract_strided_slice %8 {offsets = [0, 80], sizes = [16, 8], strides = [1, 1]} : vector<16x96xf32> to vector<16x8xf32>
    %72 = vector.shape_cast %71 : vector<16x8xf32> to vector<2x8x8xf32>
    %73 = arith.truncf %72 : vector<2x8x8xf32> to vector<2x8x8xbf16>
    "tpu.trace_start"() <{level = 10 : i32, message = "bqd,bkd->bqk"}> : () -> ()
    %cst_19 = arith.constant dense<0.000000e+00> : vector<2x8x8xf32>
    %74 = tpu.matmul %67, %70, %cst_19 {dimension_numbers = #tpu.dot_dimension_numbers<[2], [2], [1], [1], [0, 0, 0, 1, 1, 1], [0], [0]>} : vector<2x8x8xbf16>, vector<2x8x8xbf16>, vector<2x8x8xf32> -> vector<2x8x8xf32>
    "tpu.trace_stop"() : () -> ()
    %75 = vector.broadcast %10 : vector<2x1x8xf32> to vector<2x8x8xf32>
    %76 = arith.addf %74, %75 : vector<2x8x8xf32>
    %cst_20 = arith.constant dense<0xFF800000> : vector<2x8xf32>
    %77 = vector.multi_reduction <maximumf>, %76, %cst_20 [2] : vector<2x8x8xf32> to vector<2x8xf32>
    %78 = vector.shape_cast %77 : vector<2x8xf32> to vector<2x8x1xf32>
    %79 = vector.broadcast %78 : vector<2x8x1xf32> to vector<2x8x8xf32>
    %80 = arith.subf %76, %79 : vector<2x8x8xf32>
    %81 = math.exp %80 : vector<2x8x8xf32>
    %cst_21 = arith.constant dense<0.000000e+00> : vector<2x8xf32>
    %82 = vector.multi_reduction <add>, %81, %cst_21 [2] : vector<2x8x8xf32> to vector<2x8xf32>
    %83 = vector.shape_cast %82 : vector<2x8xf32> to vector<2x8x1xf32>
    %84 = tpu.reciprocal %83 {approx = true} : vector<2x8x1xf32> -> vector<2x8x1xf32>
    %85 = vector.broadcast %84 : vector<2x8x1xf32> to vector<2x8x8xf32>
    %86 = arith.mulf %81, %85 : vector<2x8x8xf32>
    %87 = arith.truncf %86 : vector<2x8x8xf32> to vector<2x8x8xbf16>
    "tpu.trace_start"() <{level = 10 : i32, message = "bqk,bkd->bqd"}> : () -> ()
    %cst_22 = arith.constant dense<0.000000e+00> : vector<2x8x8xf32>
    %88 = tpu.matmul %87, %73, %cst_22 {dimension_numbers = #tpu.dot_dimension_numbers<[2], [1], [1], [2], [0, 0, 0, 1, 1, 2], [0], [0]>} : vector<2x8x8xbf16>, vector<2x8x8xbf16>, vector<2x8x8xf32> -> vector<2x8x8xf32>
    "tpu.trace_stop"() : () -> ()
    %89 = vector.extract_strided_slice %8 {offsets = [0, 24], sizes = [16, 8], strides = [1, 1]} : vector<16x96xf32> to vector<16x8xf32>
    %cst_23 = arith.constant 0.353553385 : f32
    %90 = vector.broadcast %cst_23 : f32 to vector<16x8xf32>
    %91 = arith.mulf %89, %90 : vector<16x8xf32>
    %92 = vector.shape_cast %91 : vector<16x8xf32> to vector<2x8x8xf32>
    %93 = arith.truncf %92 : vector<2x8x8xf32> to vector<2x8x8xbf16>
    %94 = vector.extract_strided_slice %8 {offsets = [0, 56], sizes = [16, 8], strides = [1, 1]} : vector<16x96xf32> to vector<16x8xf32>
    %95 = vector.shape_cast %94 : vector<16x8xf32> to vector<2x8x8xf32>
    %96 = arith.truncf %95 : vector<2x8x8xf32> to vector<2x8x8xbf16>
    %97 = vector.extract_strided_slice %8 {offsets = [0, 88], sizes = [16, 8], strides = [1, 1]} : vector<16x96xf32> to vector<16x8xf32>
    %98 = vector.shape_cast %97 : vector<16x8xf32> to vector<2x8x8xf32>
    %99 = arith.truncf %98 : vector<2x8x8xf32> to vector<2x8x8xbf16>
    "tpu.trace_start"() <{level = 10 : i32, message = "bqd,bkd->bqk"}> : () -> ()
    %cst_24 = arith.constant dense<0.000000e+00> : vector<2x8x8xf32>
    %100 = tpu.matmul %93, %96, %cst_24 {dimension_numbers = #tpu.dot_dimension_numbers<[2], [2], [1], [1], [0, 0, 0, 1, 1, 1], [0], [0]>} : vector<2x8x8xbf16>, vector<2x8x8xbf16>, vector<2x8x8xf32> -> vector<2x8x8xf32>
    "tpu.trace_stop"() : () -> ()
    %101 = vector.broadcast %10 : vector<2x1x8xf32> to vector<2x8x8xf32>
    %102 = arith.addf %100, %101 : vector<2x8x8xf32>
    %cst_25 = arith.constant dense<0xFF800000> : vector<2x8xf32>
    %103 = vector.multi_reduction <maximumf>, %102, %cst_25 [2] : vector<2x8x8xf32> to vector<2x8xf32>
    %104 = vector.shape_cast %103 : vector<2x8xf32> to vector<2x8x1xf32>
    %105 = vector.broadcast %104 : vector<2x8x1xf32> to vector<2x8x8xf32>
    %106 = arith.subf %102, %105 : vector<2x8x8xf32>
    %107 = math.exp %106 : vector<2x8x8xf32>
    %cst_26 = arith.constant dense<0.000000e+00> : vector<2x8xf32>
    %108 = vector.multi_reduction <add>, %107, %cst_26 [2] : vector<2x8x8xf32> to vector<2x8xf32>
    %109 = vector.shape_cast %108 : vector<2x8xf32> to vector<2x8x1xf32>
    %110 = tpu.reciprocal %109 {approx = true} : vector<2x8x1xf32> -> vector<2x8x1xf32>
    %111 = vector.broadcast %110 : vector<2x8x1xf32> to vector<2x8x8xf32>
    %112 = arith.mulf %107, %111 : vector<2x8x8xf32>
    %113 = arith.truncf %112 : vector<2x8x8xf32> to vector<2x8x8xbf16>
    "tpu.trace_start"() <{level = 10 : i32, message = "bqk,bkd->bqd"}> : () -> ()
    %cst_27 = arith.constant dense<0.000000e+00> : vector<2x8x8xf32>
    %114 = tpu.matmul %113, %99, %cst_27 {dimension_numbers = #tpu.dot_dimension_numbers<[2], [1], [1], [2], [0, 0, 0, 1, 1, 2], [0], [0]>} : vector<2x8x8xbf16>, vector<2x8x8xbf16>, vector<2x8x8xf32> -> vector<2x8x8xf32>
    "tpu.trace_stop"() : () -> ()
    %115 = tpu.concatenate %36, %62, %88, %114 in 2 : vector<2x8x8xf32>, vector<2x8x8xf32>, vector<2x8x8xf32>, vector<2x8x8xf32> -> vector<2x8x32xf32>
    %116 = vector.shape_cast %115 : vector<2x8x32xf32> to vector<16x32xf32>
    %117 = arith.truncf %116 : vector<16x32xf32> to vector<16x32xbf16>
    %c0_28 = arith.constant 0 : index
    %c0_29 = arith.constant 0 : index
    %c0_30 = arith.constant 0 : index
    %118 = vector.load %arg8[%c0_28, %c0_29, %c0_30] : memref<1x32x32xbf16, #tpu.memory_space<vmem>>, vector<1x32x32xbf16>
    %119 = vector.shape_cast %118 : vector<1x32x32xbf16> to vector<32x32xbf16>
    %cst_31 = arith.constant dense<0.000000e+00> : vector<16x32xf32>
    %120 = tpu.matmul %117, %119, %cst_31 {dimension_numbers = #tpu.dot_dimension_numbers<[1], [0], [0], [1], [0, 0, 1, 1], [], []>} : vector<16x32xbf16>, vector<32x32xbf16>, vector<16x32xf32> -> vector<16x32xf32>
    %121 = arith.addf %120, %4 : vector<16x32xf32>
    %122 = vector.shape_cast %121 : vector<16x32xf32> to vector<2x8x32xf32>
    %c0_32 = arith.constant 0 : index
    %c0_33 = arith.constant 0 : index
    %c0_34 = arith.constant 0 : index
    %123 = vector.load %arg9[%c0_32, %c0_33, %c0_34] : memref<1x1x32xf32, #tpu.memory_space<vmem>>, vector<1x1x32xf32>
    %124 = vector.shape_cast %123 : vector<1x1x32xf32> to vector<1x32xf32>
    %c0_35 = arith.constant 0 : index
    %c0_36 = arith.constant 0 : index
    %c0_37 = arith.constant 0 : index
    %125 = vector.load %arg10[%c0_35, %c0_36, %c0_37] : memref<1x1x32xf32, #tpu.memory_space<vmem>>, vector<1x1x32xf32>
    %126 = vector.shape_cast %125 : vector<1x1x32xf32> to vector<1x32xf32>
    %cst_38 = arith.constant dense<0.000000e+00> : vector<2x8xf32>
    %127 = vector.multi_reduction <add>, %122, %cst_38 [2] : vector<2x8x32xf32> to vector<2x8xf32>
    %128 = vector.shape_cast %127 : vector<2x8xf32> to vector<2x8x1xf32>
    %cst_39 = arith.constant 3.200000e+01 : f32
    %129 = vector.broadcast %cst_39 : f32 to vector<2x8x1xf32>
    %130 = arith.divf %128, %129 : vector<2x8x1xf32>
    %131 = vector.broadcast %130 : vector<2x8x1xf32> to vector<2x8x32xf32>
    %132 = arith.subf %122, %131 : vector<2x8x32xf32>
    %133 = arith.mulf %132, %132 : vector<2x8x32xf32>
    %cst_40 = arith.constant dense<0.000000e+00> : vector<2x8xf32>
    %134 = vector.multi_reduction <add>, %133, %cst_40 [2] : vector<2x8x32xf32> to vector<2x8xf32>
    %135 = vector.shape_cast %134 : vector<2x8xf32> to vector<2x8x1xf32>
    %cst_41 = arith.constant 3.200000e+01 : f32
    %136 = vector.broadcast %cst_41 : f32 to vector<2x8x1xf32>
    %137 = arith.divf %135, %136 : vector<2x8x1xf32>
    %138 = vector.broadcast %130 : vector<2x8x1xf32> to vector<2x8x32xf32>
    %139 = arith.subf %122, %138 : vector<2x8x32xf32>
    %cst_42 = arith.constant 9.99999997E-7 : f32
    %140 = vector.broadcast %cst_42 : f32 to vector<2x8x1xf32>
    %141 = arith.addf %137, %140 : vector<2x8x1xf32>
    %142 = math.rsqrt %141 : vector<2x8x1xf32>
    %143 = vector.broadcast %142 : vector<2x8x1xf32> to vector<2x8x32xf32>
    %144 = arith.mulf %139, %143 : vector<2x8x32xf32>
    %145 = vector.shape_cast %124 : vector<1x32xf32> to vector<1x1x32xf32>
    %146 = vector.broadcast %145 : vector<1x1x32xf32> to vector<2x8x32xf32>
    %147 = arith.mulf %144, %146 : vector<2x8x32xf32>
    %148 = vector.shape_cast %126 : vector<1x32xf32> to vector<1x1x32xf32>
    %149 = vector.broadcast %148 : vector<1x1x32xf32> to vector<2x8x32xf32>
    %150 = arith.addf %147, %149 : vector<2x8x32xf32>
    %151 = vector.shape_cast %150 : vector<2x8x32xf32> to vector<16x32xf32>
    %152 = arith.truncf %151 : vector<16x32xf32> to vector<16x32xbf16>
    %c0_43 = arith.constant 0 : index
    %c0_44 = arith.constant 0 : index
    %c0_45 = arith.constant 0 : index
    %153 = vector.load %arg11[%c0_43, %c0_44, %c0_45] : memref<1x32x64xbf16, #tpu.memory_space<vmem>>, vector<1x32x64xbf16>
    %154 = vector.shape_cast %153 : vector<1x32x64xbf16> to vector<32x64xbf16>
    %cst_46 = arith.constant dense<0.000000e+00> : vector<16x64xf32>
    %155 = tpu.matmul %152, %154, %cst_46 {dimension_numbers = #tpu.dot_dimension_numbers<[1], [0], [0], [1], [0, 0, 1, 1], [], []>} : vector<16x32xbf16>, vector<32x64xbf16>, vector<16x64xf32> -> vector<16x64xf32>
    %c0_47 = arith.constant 0 : index
    %c0_48 = arith.constant 0 : index
    %c0_49 = arith.constant 0 : index
    %156 = vector.load %arg12[%c0_47, %c0_48, %c0_49] : memref<1x1x64xf32, #tpu.memory_space<vmem>>, vector<1x1x64xf32>
    %157 = vector.shape_cast %156 : vector<1x1x64xf32> to vector<1x64xf32>
    %158 = vector.broadcast %157 : vector<1x64xf32> to vector<16x64xf32>
    %159 = arith.addf %155, %158 : vector<16x64xf32>
    %cst_50 = arith.constant 0.000000e+00 : f32
    %160 = vector.broadcast %cst_50 : f32 to vector<16x64xf32>
    %161 = arith.maximumf %159, %160 : vector<16x64xf32>
    %162 = arith.truncf %161 : vector<16x64xf32> to vector<16x64xbf16>
    %c0_51 = arith.constant 0 : index
    %c0_52 = arith.constant 0 : index
    %c0_53 = arith.constant 0 : index
    %163 = vector.load %arg13[%c0_51, %c0_52, %c0_53] : memref<1x64x32xbf16, #tpu.memory_space<vmem>>, vector<1x64x32xbf16>
    %164 = vector.shape_cast %163 : vector<1x64x32xbf16> to vector<64x32xbf16>
    %cst_54 = arith.constant dense<0.000000e+00> : vector<16x32xf32>
    %165 = tpu.matmul %162, %164, %cst_54 {dimension_numbers = #tpu.dot_dimension_numbers<[1], [0], [0], [1], [0, 0, 1, 1], [], []>} : vector<16x64xbf16>, vector<64x32xbf16>, vector<16x32xf32> -> vector<16x32xf32>
    %c0_55 = arith.constant 0 : index
    %c0_56 = arith.constant 0 : index
    %c0_57 = arith.constant 0 : index
    %166 = vector.load %arg14[%c0_55, %c0_56, %c0_57] : memref<1x1x32xf32, #tpu.memory_space<vmem>>, vector<1x1x32xf32>
    %167 = vector.shape_cast %166 : vector<1x1x32xf32> to vector<1x32xf32>
    %168 = vector.broadcast %167 : vector<1x32xf32> to vector<16x32xf32>
    %169 = arith.addf %165, %168 : vector<16x32xf32>
    %170 = arith.addf %169, %151 : vector<16x32xf32>
    %171 = vector.shape_cast %170 : vector<16x32xf32> to vector<2x8x32xf32>
    %c0_58 = arith.constant 0 : index
    %c0_59 = arith.constant 0 : index
    %c0_60 = arith.constant 0 : index
    %172 = vector.load %arg15[%c0_58, %c0_59, %c0_60] : memref<1x1x32xf32, #tpu.memory_space<vmem>>, vector<1x1x32xf32>
    %173 = vector.shape_cast %172 : vector<1x1x32xf32> to vector<1x32xf32>
    %c0_61 = arith.constant 0 : index
    %c0_62 = arith.constant 0 : index
    %c0_63 = arith.constant 0 : index
    %174 = vector.load %arg16[%c0_61, %c0_62, %c0_63] : memref<1x1x32xf32, #tpu.memory_space<vmem>>, vector<1x1x32xf32>
    %175 = vector.shape_cast %174 : vector<1x1x32xf32> to vector<1x32xf32>
    %cst_64 = arith.constant dense<0.000000e+00> : vector<2x8xf32>
    %176 = vector.multi_reduction <add>, %171, %cst_64 [2] : vector<2x8x32xf32> to vector<2x8xf32>
    %177 = vector.shape_cast %176 : vector<2x8xf32> to vector<2x8x1xf32>
    %cst_65 = arith.constant 3.200000e+01 : f32
    %178 = vector.broadcast %cst_65 : f32 to vector<2x8x1xf32>
    %179 = arith.divf %177, %178 : vector<2x8x1xf32>
    %180 = vector.broadcast %179 : vector<2x8x1xf32> to vector<2x8x32xf32>
    %181 = arith.subf %171, %180 : vector<2x8x32xf32>
    %182 = arith.mulf %181, %181 : vector<2x8x32xf32>
    %cst_66 = arith.constant dense<0.000000e+00> : vector<2x8xf32>
    %183 = vector.multi_reduction <add>, %182, %cst_66 [2] : vector<2x8x32xf32> to vector<2x8xf32>
    %184 = vector.shape_cast %183 : vector<2x8xf32> to vector<2x8x1xf32>
    %cst_67 = arith.constant 3.200000e+01 : f32
    %185 = vector.broadcast %cst_67 : f32 to vector<2x8x1xf32>
    %186 = arith.divf %184, %185 : vector<2x8x1xf32>
    %187 = vector.broadcast %179 : vector<2x8x1xf32> to vector<2x8x32xf32>
    %188 = arith.subf %171, %187 : vector<2x8x32xf32>
    %cst_68 = arith.constant 9.99999997E-7 : f32
    %189 = vector.broadcast %cst_68 : f32 to vector<2x8x1xf32>
    %190 = arith.addf %186, %189 : vector<2x8x1xf32>
    %191 = math.rsqrt %190 : vector<2x8x1xf32>
    %192 = vector.broadcast %191 : vector<2x8x1xf32> to vector<2x8x32xf32>
    %193 = arith.mulf %188, %192 : vector<2x8x32xf32>
    %194 = vector.shape_cast %173 : vector<1x32xf32> to vector<1x1x32xf32>
    %195 = vector.broadcast %194 : vector<1x1x32xf32> to vector<2x8x32xf32>
    %196 = arith.mulf %193, %195 : vector<2x8x32xf32>
    %197 = vector.shape_cast %175 : vector<1x32xf32> to vector<1x1x32xf32>
    %198 = vector.broadcast %197 : vector<1x1x32xf32> to vector<2x8x32xf32>
    %199 = arith.addf %196, %198 : vector<2x8x32xf32>
    %c0_69 = arith.constant 0 : index
    %c0_70 = arith.constant 0 : index
    %c0_71 = arith.constant 0 : index
    %200 = vector.load %arg18[%c0_69, %c0_70, %c0_71] : memref<2x8x32xf32, #tpu.memory_space<vmem>>, vector<2x8x32xf32>
    tpu.vector_store %arg18[%c0_69, %c0_70, %c0_71], %199 {strides = array<i32>} : memref<2x8x32xf32, #tpu.memory_space<vmem>>, vector<2x8x32xf32>,
    %c1_i32 = arith.constant 1 : i32
    %201 = arith.cmpi eq, %arg1, %c1_i32 : i32
    %202 = arith.extui %201 : i1 to i32
    %c0_i32_72 = arith.constant 0 : i32
    %203 = arith.cmpi ne, %202, %c0_i32_72 : i32
    scf.if %203 {
      %c0_73 = arith.constant 0 : index
      %c0_74 = arith.constant 0 : index
      %c0_75 = arith.constant 0 : index
      %204 = vector.load %arg17[%c0_73, %c0_74, %c0_75] : memref<2x8x32xf32, #tpu.memory_space<vmem>>, vector<2x8x32xf32>
      tpu.vector_store %arg17[%c0_73, %c0_74, %c0_75], %199 {strides = array<i32>} : memref<2x8x32xf32, #tpu.memory_space<vmem>>, vector<2x8x32xf32>,
    } else {
    }
    return
  }
  func.func @transform_0(%arg0: i32, %arg1: i32) -> (i32, i32, i32) {
    %c0_i32 = arith.constant 0 : i32
    %c0_i32_0 = arith.constant 0 : i32
    %c0_i32_1 = arith.constant 0 : i32
    return %arg0, %c0_i32, %c0_i32_0 : i32, i32, i32
  }
  func.func @transform_1(%arg0: i32, %arg1: i32) -> (i32, i32) {
    %c0_i32 = arith.constant 0 : i32
    %c0_i32_0 = arith.constant 0 : i32
    %c0_i32_1 = arith.constant 0 : i32
    return %c0_i32, %c0_i32_0 : i32, i32
  }
  func.func @transform_2(%arg0: i32, %arg1: i32) -> (i32, i32) {
    %c0_i32 = arith.constant 0 : i32
    %c0_i32_0 = arith.constant 0 : i32
    return %arg0, %c0_i32 : i32, i32
  }
  func.func @transform_3(%arg0: i32, %arg1: i32) -> (i32, i32) {
    %c0_i32 = arith.constant 0 : i32
    %c0_i32_0 = arith.constant 0 : i32
    %c0_i32_1 = arith.constant 0 : i32
    return %c0_i32, %c0_i32_0 : i32, i32
  }
  func.func @transform_4(%arg0: i32, %arg1: i32) -> (i32, i32) {
    %c0_i32 = arith.constant 0 : i32
    %c0_i32_0 = arith.constant 0 : i32
    %c0_i32_1 = arith.constant 0 : i32
    return %c0_i32, %c0_i32_0 : i32, i32
  }
  func.func @transform_5(%arg0: i32, %arg1: i32) -> (i32, i32, i32) {
    %c0_i32 = arith.constant 0 : i32
    %c0_i32_0 = arith.constant 0 : i32
    %c0_i32_1 = arith.constant 0 : i32
    return %arg1, %c0_i32, %c0_i32_0 : i32, i32, i32
  }
  func.func @transform_6(%arg0: i32, %arg1: i32) -> (i32, i32, i32) {
    %c0_i32 = arith.constant 0 : i32
    %c0_i32_0 = arith.constant 0 : i32
    %c0_i32_1 = arith.constant 0 : i32
    return %arg1, %c0_i32, %c0_i32_0 : i32, i32, i32
  }
  func.func @transform_7(%arg0: i32, %arg1: i32) -> (i32, i32, i32) {
    %c0_i32 = arith.constant 0 : i32
    %c0_i32_0 = arith.constant 0 : i32
    %c0_i32_1 = arith.constant 0 : i32
    return %arg1, %c0_i32, %c0_i32_0 : i32, i32, i32
  }
  func.func @transform_8(%arg0: i32, %arg1: i32) -> (i32, i32, i32) {
    %c0_i32 = arith.constant 0 : i32
    %c0_i32_0 = arith.constant 0 : i32
    %c0_i32_1 = arith.constant 0 : i32
    return %arg1, %c0_i32, %c0_i32_0 : i32, i32, i32
  }
  func.func @transform_9(%arg0: i32, %arg1: i32) -> (i32, i32, i32) {
    %c0_i32 = arith.constant 0 : i32
    %c0_i32_0 = arith.constant 0 : i32
    %c0_i32_1 = arith.constant 0 : i32
    return %arg1, %c0_i32, %c0_i32_0 : i32, i32, i32
  }
  func.func @transform_10(%arg0: i32, %arg1: i32) -> (i32, i32, i32) {
    %c0_i32 = arith.constant 0 : i32
    %c0_i32_0 = arith.constant 0 : i32
    %c0_i32_1 = arith.constant 0 : i32
    return %arg1, %c0_i32, %c0_i32_0 : i32, i32, i32
  }
  func.func @transform_11(%arg0: i32, %arg1: i32) -> (i32, i32, i32) {
    %c0_i32 = arith.constant 0 : i32
    %c0_i32_0 = arith.constant 0 : i32
    %c0_i32_1 = arith.constant 0 : i32
    return %arg1, %c0_i32, %c0_i32_0 : i32, i32, i32
  }
  func.func @transform_12(%arg0: i32, %arg1: i32) -> (i32, i32, i32) {
    %c0_i32 = arith.constant 0 : i32
    %c0_i32_0 = arith.constant 0 : i32
    %c0_i32_1 = arith.constant 0 : i32
    return %arg1, %c0_i32, %c0_i32_0 : i32, i32, i32
  }
  func.func @transform_13(%arg0: i32, %arg1: i32) -> (i32, i32, i32) {
    %c0_i32 = arith.constant 0 : i32
    %c0_i32_0 = arith.constant 0 : i32
    %c0_i32_1 = arith.constant 0 : i32
    return %arg1, %c0_i32, %c0_i32_0 : i32, i32, i32
  }
  func.func @transform_14(%arg0: i32, %arg1: i32) -> (i32, i32, i32) {
    %c0_i32 = arith.constant 0 : i32
    %c0_i32_0 = arith.constant 0 : i32
    %c0_i32_1 = arith.constant 0 : i32
    return %arg1, %c0_i32, %c0_i32_0 : i32, i32, i32
  }
  func.func @transform_15(%arg0: i32, %arg1: i32) -> (i32, i32, i32) {
    %c0_i32 = arith.constant 0 : i32
    %c0_i32_0 = arith.constant 0 : i32
    %c0_i32_1 = arith.constant 0 : i32
    return %arg0, %c0_i32, %c0_i32_0 : i32, i32, i32
  }
}

</mosaic_0001>

<bundles_post_ra>
// kernel: tpu_custom_call.1
= control target key start
LH: loop header
LB: loop body
LE: loop exit
PB: predicated region body
PF: predicated region fallthrough
CT: control target
= control target key end

     0   :  { %s3425_s0 = inlined_call_operand.hbm [shape: f32[2,8,32], index: 0, kind: input, shape index: {}]   ;;  %s3426_s1 = inlined_call_operand.hbm [shape: f32[8,32], index: 1, kind: input, shape index: {}]   ;;  %s3427_s2 = inlined_call_operand.vmem [shape: f32[2,8], index: 2, kind: input, shape index: {}]   ;;  %s3428_s3 = inlined_call_operand.hbm [shape: f32[1,32], index: 3, kind: input, shape index: {}]   ;;  %s3429_s4 = inlined_call_operand.hbm [shape: f32[1,32], index: 4, kind: input, shape index: {}]   ;;  %s3430_s5 = inlined_call_operand.vmem [shape: bf16[2,32,96], index: 5, kind: input, shape index: {}]   ;;  %s3431_s6 = inlined_call_operand.vmem [shape: bf16[2,32,32], index: 6, kind: input, shape index: {}]   ;;  %s3432_s7 = inlined_call_operand.vmem [shape: f32[2,1,32], index: 7, kind: input, shape index: {}]   ;;  %s3433_s8 = inlined_call_operand.vmem [shape: f32[2,1,32], index: 8, kind: input, shape index: {}]   ;;  %s3434_s9 = inlined_call_operand.vmem [shape: bf16[2,32,64], index: 9, kind: input, shape index: {}]   ;;  %s3435_s10 = inlined_call_operand.vmem [shape: f32[2,1,64], index: 10, kind: input, shape index: {}]   ;;  %s3436_s11 = inlined_call_operand.vmem [shape: bf16[2,64,32], index: 11, kind: input, shape index: {}]   ;;  %s3437_s12 = inlined_call_operand.vmem [shape: f32[2,1,32], index: 12, kind: input, shape index: {}]   ;;  %s3438_s13 = inlined_call_operand.vmem [shape: f32[2,1,32], index: 13, kind: input, shape index: {}]   ;;  %s3439_s14 = inlined_call_operand.vmem [shape: f32[2,1,32], index: 14, kind: input, shape index: {}]   ;;  %s3440_s15 = inlined_call_operand.hbm [shape: f32[2,8,32], index: 15, kind: output, shape index: {}]  }
   0x1   :  { %3443 = sst [smem:[#allocation18_spill]] %s3425_s0 }
   0x2   :  { %3444 = sst [smem:[#allocation19_spill]] %s3426_s1 }
   0x3   :  { %3445 = sst [smem:[#allocation20_spill]] %s3428_s3 }
   0x4   :  { %3446 = sst [smem:[#allocation21_spill]] %s3429_s4 }
   0x5   :  { %3447 = sst [smem:[#allocation22_spill]] %s3430_s5 }
   0x6   :  { %3448 = sst [smem:[#allocation23_spill]] %s3431_s6 }
   0x7   :  { %3449 = sst [smem:[#allocation24_spill]] %s3434_s9 }
   0x8   :  { %20 = vsyncpa [#allocation4], 0 }
   0x9   :  { %21 = vsyncpa [#allocation7], 0 }
   0xa   :  { %22 = vsyncpa [#allocation10], 0 }
   0xb   :  { %23 = vsyncpa [#allocation5], 0  ;;  %s3005_s18 = smov 0   ;;  %s3007_s19 = smov 0  }
   0xc   :  { %s3009_s20 = smov 0  }
   0xd LB: > { %3450 = sst [smem:[#allocation16_spill]] %s2894_s19  ;;  %s2900_s21 = smov [#allocation6]   ;;  %s2898_s20 = sphi %s3009_s20, %s29_s20   ;;  %s2894_s19 = sphi %s3007_s19, %s3468_s19   ;;  %s2890_s18 = sphi %s3005_s18, %s3467_s18  }
   0xe   : > { %s476_s22 = sshll.u32 %s2900_s21, 4  ;;  %s3441_s23 = sadd.s32 4294967295, %s2898_s20   ;;  %s477_s22 = int_to_ptr.vmem [resolvable:$true] %s476_s22 }
   0xf   : > { %p2324_p0 = scmp.ge.s32.totalorder %s2898_s20, 1  ;;  %p447_p1 = scmp.lt.s32.totalorder %s2898_s20, 3 }
  0x10   : > { %p3025_p2 = scmp.eq.s32.totalorder %s3441_s23, 0  ;;  %s38_s26 = sadd.s32 1, %s2894_s19 }
  0x11   : > { %p3029_p3 = pnand %p2324_p0, %p447_p1  ;;  %p3042_p6 = scmp.ge.s32.totalorder %s38_s26, 2 }
  0x12   : > { %s2901_s29 = smov [#allocation3]   ;;  %s2743_s16 = scalar_lea.vmem %s477_s22, 128 }
  0x13   : > { %p2591_p4 = pneg %p3029_p3  ;;  %s462_s30 = sshll.u32 %s2901_s29, 4  ;;  %s463_s30 = int_to_ptr.vmem [resolvable:$true] %s462_s30 }
  0x14   : > { %p2744_p8 = scmp.ne.s32.totalorder %s477_s22, %s2743_s16  ;;  %p2751_p11 = scmp.lt.s32.totalorder %s477_s22, %s477_s22 }
  0x15   : > { %p3038_p5 = pnand %p3025_p2, %p2591_p4  ;;  %p2752_p12 = scmp.lt.s32.totalorder %s2743_s16, %s2743_s16 }
  0x17   : > { %p2734_p7 = pneg %p3038_p5  ;;  %p2753_p13 = por %p2752_p12, %p2751_p11 }
  0x19   : > { %p2746_p9 = pnand %p2744_p8, %p2734_p7 }
  0x1b   : > { %p2747_p10 = pneg %p2746_p9 }
  0x1d   : > { %p2754_p0 = pnand %p2753_p13, %p2747_p10 }
  0x1f   : > { %2757 = shalt.err (!%p2754_p0)
}
  0x20   : > { %s3455_s1 = sld [smem:[#allocation19_spill]]  ;;  %s3470_s26 = smov (%p3042_p6, %s38_s26), 0 }
  0x21   : > { %3456 = sst [smem:[#allocation17_spill]] %s3470_s26  ;;  %s2769_s29 = scalar_lea.vmem %s463_s30, 256 }
  0x22   : > { %p2770_p1 = scmp.ne.s32.totalorder %s463_s30, %s2769_s29  ;;  %p2777_p9 = scmp.lt.s32.totalorder %s463_s30, %s463_s30 }
  0x23   : > { %p2778_p10 = scmp.lt.s32.totalorder %s2769_s29, %s2769_s29 }
  0x24   : > { %p2772_p4 = pnand %p2770_p1, %p2734_p7 }
  0x25   : > { %p2779_p11 = por %p2778_p10, %p2777_p9 }
  0x26   : > { %2597 = dma.hbm_to_vmem [thread:$0]  (!%p3038_p5), %s3455_s1, 128, %s477_s22, [#allocation7]  }
  0x27   : > { %p2773_p8 = pneg %p2772_p4 }
  0x29   : > { %p2780_p12 = pnand %p2779_p11, %p2773_p8 }
  0x2b   : > { %2783 = shalt.err (!%p2780_p12)
}
  0x2c   : > { %s2902_s16 = smov 128   ;;  %s2903_s17 = smov 8  }
  0x2d   : > { %s3457_s0 = sld [smem:[#allocation18_spill]]  ;;  %s2904_s21 = smov [#allocation8]  }
  0x2e   : > { %s494_s23 = sshll.u32 %s2904_s21, 4  ;;  %s2905_s1 = smov [#allocation9]   ;;  %s495_s23 = int_to_ptr.vmem [resolvable:$true] %s494_s23 }
  0x2f   : > { %s505_s26 = sshll.u32 %s2905_s1, 4  ;;  %s2795_s19 = scalar_lea.vmem %s495_s23, 16  ;;  %s506_s26 = int_to_ptr.vmem [resolvable:$true] %s505_s26 }
  0x30   : > { %p2796_p6 = scmp.ne.s32.totalorder %s495_s23, %s2795_s19  ;;  %s2802_s29 = scalar_lea.vmem %s495_s23, 32 }
  0x31   : > { %p2803_p1 = scmp.lt.s32.totalorder %s495_s23, %s495_s23  ;;  %p2804_p4 = scmp.lt.s32.totalorder %s2802_s29, %s2795_s19 }
  0x32   : > { %p2798_p13 = pnand %p2796_p6, %p2734_p7 }
  0x33   : > { %2594 = dma.hbm_to_vmem [thread:$0]  (!%p3038_p5), %s3457_s0, 256, %s463_s30, [#allocation4], %s2902_s16, %s2902_s16, %s2903_s17  }
  0x34   : > { %p2799_p0 = pneg %p2798_p13  ;;  %p2805_p8 = por %p2804_p4, %p2803_p1 }
  0x36   : > { %p2806_p9 = pnand %p2805_p8, %p2799_p0 }
  0x38   : > { %2809 = shalt.err (!%p2806_p9)
}
  0x39   : > { %s3458_s3 = sld [smem:[#allocation20_spill]]  ;;  %s2821_s1 = scalar_lea.vmem %s506_s26, 16 }
  0x3a   : > { %p2822_p10 = scmp.ne.s32.totalorder %s506_s26, %s2821_s1  ;;  %s2828_s17 = scalar_lea.vmem %s506_s26, 32 }
  0x3b   : > { %p2829_p6 = scmp.lt.s32.totalorder %s506_s26, %s506_s26  ;;  %p2830_p13 = scmp.lt.s32.totalorder %s2828_s17, %s2821_s1 }
  0x3c   : > { %p2824_p11 = pnand %p2822_p10, %p2734_p7 }
  0x3d   : > { %p2831_p1 = por %p2830_p13, %p2829_p6 }
  0x3e   : > { %p2825_p12 = pneg %p2824_p11 }
  0x3f   : > { %2600 = dma.hbm_to_vmem [thread:$0]  (!%p3038_p5), %s3458_s3, 16, %s495_s23, [#allocation7]  }
  0x40   : > { %p2832_p0 = pnand %p2831_p1, %p2825_p12 }
  0x42   : > { %2835 = shalt.err (!%p2832_p0)
}
  0x43   : > { %s3459_s4 = sld [smem:[#allocation21_spill]] }
  0x45   : > { %586 = sbr.rel (%p3029_p3) target bundleno = 4353 (0x1101), region = 80 }
  0x49   : > { %2603 = dma.hbm_to_vmem [thread:$0]  (!%p3038_p5), %s3459_s4, 16, %s506_s26, [#allocation10]  }
  0x4a   : > { %2873 = dma.done.wait (%p3025_p2), [#allocation4], 256  }
  0x4b   : > { %2875 = vsyncadd (%p3025_p2), [#allocation4], 4294967040 }
  0x4c   : > { %2877 = dma.done.wait (%p3025_p2), [#allocation7], 144  }
  0x4d   : > { %2879 = vsyncadd (%p3025_p2), [#allocation7], 4294967152 }
  0x4e   : > { %2881 = dma.done.wait (%p3025_p2), [#allocation10], 16  }
  0x4f   : > { %2883 = vsyncadd (%p3025_p2), [#allocation10], 4294967280  ;;  %p683_p3 = scmp.lt.s32.totalorder %s2890_s18, 1  ;;  %s3460_s5 = sld [smem:[#allocation22_spill]] }
  0x50   : > { %s3461_s6 = sld [smem:[#allocation23_spill]]  ;;  %p2344_p2 = scmp.ne.s32.totalorder %s2890_s18, 0 }
  0x51   : > { %s3100_s23 = scalar_select %p683_p3, %s2890_s18, 1 }
  0x52   : > { %s3462_s9 = sld [smem:[#allocation24_spill]] }
  0x53   : > { %s2389_s25 = sshll.u32 %s3100_s23, 4  ;;  %s706_s24 = scalar_lea.vmem %s3435_s10, %s3100_s23 }
  0x54   : > { %s2392_s21 = sshll.u32 %s3100_s23, 5  ;;  %s714_s17 = scalar_lea.vmem %s3437_s12, %s3100_s23 }
  0x55   : > { %s3110_s29 = scalar_lea.vmem %s3460_s5, %s2389_s25  ;;  %s3134_s30 = scalar_lea.vmem %s3436_s11, %s2392_s21 }
  0x56   : > { %s3115_s1 = scalar_lea.vmem %s3461_s6, %s2389_s25  ;;  %s717_s0 = scalar_lea.vmem %s3438_s13, %s3100_s23 }
  0x57   : > { %726 = sbr.rel (%p2344_p2) target bundleno = 408 (0x198), region = 100 }
  0x58   : > { %s3124_s4 = scalar_lea.vmem %s3462_s9, %s2389_s25  ;;  %s720_s9 = scalar_lea.vmem %s3439_s14, %s3100_s23 }
  0x5c   : > { %v727_v0 = vld [vmem:[#allocation3] sm:$0xff]  ;;  %v729_v1 = vld [vmem:[#allocation6] sm:$0xff]  ;;  %vm734_vm0 = vcmask 261120   ;;  %v728_v2 = vld [vmem:[#allocation3 + $0x8] sm:$0xff] }
  0x5d   : > { %v730_v3 = vadd.f32 %v729_v1, %v727_v0  ;;  %v731_v4 = vadd.f32 %v729_v1, %v728_v2  ;;  %v2345_v24 = vld [vmem:[#allocation8] ss:$0 sm:$0xff]  ;;  %v2346_v26 = vld [vmem:[#allocation9] ss:$0 sm:$0xff] }
  0x5f   : > { %v735_v5 = vsel %vm734_vm0, %v730_v3, 0.0  ;;  %v738_v6 = vsel %vm734_vm0, %v731_v4, 0.0 }
  0x60   : > { %736 = vadd.xlane.f32.xlu0 %v735_v5 }
  0x64   : > { %739 = vadd.xlane.f32.xlu0 %v738_v6 }
  0xe9   : > { %v737_v7 = vpop.xlane.xlu0 %736 }
  0xea   : > { %v742_v8 = vmul.f32 0.03125, %v737_v7 }
  0xec   : > { %v744_v9 = vsub.f32 %v730_v3, %v742_v8 }
  0xed   : > { %v740_v10 = vpop.xlane.xlu0 %739 }
  0xee   : > { %v743_v11 = vmul.f32 0.03125, %v740_v10  ;;  %v746_v12 = vmul.f32 %v744_v9, %v744_v9 }
  0xf0   : > { %v745_v13 = vsub.f32 %v731_v4, %v743_v11  ;;  %v748_v14 = vsel %vm734_vm0, %v746_v12, 0.0 }
  0xf1   : > { %749 = vadd.xlane.f32.xlu1 %v748_v14 }
  0xf2   : > { %v747_v15 = vmul.f32 %v745_v13, %v745_v13 }
  0xf4   : > { %v751_v16 = vsel %vm734_vm0, %v747_v15, 0.0 }
  0xf5   : > { %752 = vadd.xlane.f32.xlu1 %v751_v16 }
 0x17a   : > { %v750_v17 = vpop.xlane.xlu1 %749 }
 0x17b   : > { %v754_v18 = vmul.f32 0.03125, %v750_v17 }
 0x17d   : > { %v756_v19 = vadd.f32 1e-06, %v754_v18 }
 0x17e   : > { %v753_v20 = vpop.xlane.xlu1 %752 }
 0x17f   : > { %2663 = vrsqrt.f32 %v756_v19  ;;  %v755_v21 = vmul.f32 0.03125, %v753_v20 }
 0x181   : > { %v757_v22 = vadd.f32 1e-06, %v755_v21 }
 0x183   : > { %2665 = vrsqrt.f32 %v757_v22 }
 0x18c   : > { %v2664_v23 = vpop.eup %2663 }
 0x18d   : > { %v760_v25 = vmul.f32 %v2664_v23, %v744_v9 }
 0x18f   : > { %v768_v27 = vmul.f32 %v2345_v24, %v760_v25 }
 0x190   : > { %v2666_v28 = vpop.eup %2665 }
 0x191   : > { %v776_v29 = vadd.f32 %v2346_v26, %v768_v27  ;;  %v761_v30 = vmul.f32 %v2666_v28, %v745_v13 }
 0x193   : > { %778 = vst.msk [vmem:[#allocation2] sm:$0xff] %vm734_vm0, %v776_v29  ;;  %v769_v31 = vmul.f32 %v2345_v24, %v761_v30 }
 0x195   : > { %v777_v32 = vadd.f32 %v2346_v26, %v769_v31 }
 0x197   : > { %779 = vst.msk [vmem:[#allocation2 + $0x8] sm:$0xff] %vm734_vm0, %v777_v32 }
 0x198 PF: > { %v2682_v33 = vld [vmem:[%s3110_s29 + $0x8] sm:$0xff]   ;;  %v2906_v34 = vmov 0.0   ;;  %v2683_v35 = vld [vmem:[%s3110_s29] sm:$0xff]   ;;  %vm2907_vm1 = vmmov 0   ;;  %vm799_vm2 = vcmask 261120   ;;  %s2908_s5 = smov 96   ;;  %v857_v55 = vlaneseq }
 0x199   : > { %2439 = vmatprep.subr.bf16.mxu0 %v2906_v34  ;;  %2447 = vmatprep.subr.bf16.mxu1 %v2906_v34  ;;  %vm887_vm3 = vcmask 64512   ;;  %v2909_v53 = vmov 1966171168   ;;  %s2910_s29 = smov 64   ;;  %s2911_s22 = smov 88   ;;  %vm1012_vm4 = vcmask 1043456  }
 0x19a   : > { %2440 = vmatpush3.bf16.msra.mxu0 %v2682_v33  ;;  %2443 = vmatprep.mubr.msk.bf16.mxu0 %vm2907_vm1, %v2906_v34  ;;  %v3161_v36 = vld [vmem:[#allocation2] sm:$0xff]  ;;  %v855_v54 = vunpack.c.l.s4 %v2909_v53  ;;  %v858_v57 = vshrl.u32 %v857_v55, 7  ;;  %s2912_s26 = smov 120   ;;  %s2913_s27 = smov 56   ;;  %vm1792_vm5 = vcmask 130048   ;;  %vm1795_vm6 = vcmask 195584  }
 0x19b   : > { %2441 = vmatprep.subr.bf16.mxu0 %v2906_v34  ;;  %2449 = vmatprep.mubr.msk.bf16.mxu1 %vm2907_vm1, %v2906_v34  ;;  %v2350_v59 = vld.sshfl [vmem:[%s3427_s2] sm:$0x11 pattern:$0x75316420]  ;;  %s2914_s21 = smov 80   ;;  %s2915_s16 = smov 112  }
 0x19c   : > { %v856_v56 = vunpack.c.0.s8 %v855_v54  ;;  %v876_v61 = vsub.s32 0, %v858_v57  ;;  %v853_v62 = vcombine.high %v2350_v59, %v2350_v59  ;;  %s2916_s19 = smov 48   ;;  %s2917_s3 = smov 72   ;;  %vm2014_vm7 = vcmask 523264  }
 0x19d   : > { %s2918_s25 = smov 104   ;;  %s2920_s6 = smov 8  }
 0x19e   : > { %v3163_v37 = vld [vmem:[#allocation2 + $0x8] sm:$0xff]  ;;  %2442 = vmatpush3.bf16.msra.mxu0 %v2683_v35  ;;  %v859_v58 = vsub.s32 %v856_v56, %v858_v57  ;;  %s2921_s28 = smov 16   ;;  %p2384_p5 = scmp.ne.s32.totalorder %s2890_s18, 1 }
 0x19f   : > { %v782_v38 = vpack.c.bf16 %v3163_v37, %v3161_v36  ;;  %2453 = vmatprep.subr.bf16.mxu0 %v2906_v34 }
 0x1a0   : > { %v860_v60 = vrot.slane %v2350_v59, %v859_v58  ;;  %v867_v0 = vrot.slane %v853_v62, %v859_v58 }
 0x1a1   : > { %2444 = vmatmul.mubr.msk.bf16.vlgmr.msra.gmra.mxu0 %vm799_vm2, %v782_v38 }
 0x1a2   : > { %2455 = vmatprep.mubr.msk.bf16.mxu0 %vm2907_vm1, %v2906_v34  ;;  %v3199_v63 = vrot.slane %v860_v60, %v876_v61  ;;  %v3202_v3 = vrot.slane %v867_v0, %v876_v61 }
 0x261   : > { %v837_v39 = vpop.f32.mrf.mxu0 }
 0x262   : > { %v3174_v40 = vpack.c.bf16 %v837_v39, %v837_v39  ;;  %v868_v47 = vmul.f32 0.35355338, %v837_v39 }
 0x263   : > { %v2445_v41 = vpop.f32.mrf.mxu0 }
 0x264   : > { %885 = vrot.lane.b32.xlu0 %v3174_v40, %s2908_s5  ;;  %v3183_v50 = vpack.c.bf16 %v868_v47, %v868_v47 }
 0x265   : > { %v840_v42 = vpop.f32.mrf.mxu0 }
 0x266   : > { %v3177_v43 = vpack.c.bf16 %v840_v42, %v840_v42  ;;  %v869_v51 = vmul.f32 0.35355338, %v840_v42 }
 0x267   : > { %v2446_v44 = vpop.f32.mrf.mxu0 }
 0x268   : > { %935 = vrot.lane.b32.xlu0 %v3177_v43, %s2908_s5  ;;  %v3190_v52 = vpack.c.bf16 %v869_v51, %v869_v51  ;;  %s2919_s5 = smov 40  }
 0x2d6   : > { %v886_v45 = vpop.permute.xlu0 %885 }
 0x2d7   : > { %v892_v46 = vsel %vm887_vm3, %v886_v45, 0 }
 0x2d8   : > { %2448 = vmatpush3.bf16.xpose.msra.mxu1 %v892_v46 }
 0x2d9   : > { %2459 = vmatprep.subr.bf16.mxu1 %v2906_v34 }
 0x2da   : > { %v936_v48 = vpop.permute.xlu0 %935 }
 0x2db   : > { %v941_v49 = vsel %vm887_vm3, %v936_v48, 0 }
 0x2dc   : > { %2454 = vmatpush3.bf16.xpose.msra.mxu0 %v941_v49 }
 0x2dd   : > { %2465 = vmatprep.subr.bf16.mxu0 %v2906_v34 }
 0x2df   : > { %2450 = vmatmul.mubr.msk.bf16.vlgmr.msra.gmra.mxu1 %vm887_vm3, %v3183_v50 }
 0x2e0   : > { %2461 = vmatprep.mubr.msk.bf16.mxu1 %vm2907_vm1, %v2906_v34 }
 0x2e3   : > { %2456 = vmatmul.mubr.msk.bf16.vlgmr.msra.gmra.mxu0 %vm887_vm3, %v3190_v52 }
 0x2e4   : > { %2467 = vmatprep.mubr.msk.bf16.mxu0 %vm2907_vm1, %v2906_v34 }
 0x39f   : > { %v928_v1 = vpop.f32.mrf.mxu1 }
 0x3a0   : > { %v929_v2 = vadd.f32 %v928_v1, %v3199_v63 }
 0x3a1   : > { %v2451_v4 = vpop.f32.mrf.mxu1 }
 0x3a2   : > { %v983_v5 = vsel %vm887_vm3, %v929_v2, -inf }
 0x3a3   : > { %984 = vmax.xlane.f32.xlu1 %v983_v5  ;;  %v931_v6 = vpop.f32.mrf.mxu1  ;;  %v977_v7 = vpop.f32.mrf.mxu0 }
 0x3a4   : > { %v978_v8 = vadd.f32 %v977_v7, %v3202_v3 }
 0x3a5   : > { %v2452_v9 = vpop.f32.mrf.mxu1  ;;  %v2457_v10 = vpop.f32.mrf.mxu0 }
 0x3a6   : > { %v986_v11 = vsel %vm887_vm3, %v978_v8, -inf }
 0x3a7   : > { %987 = vmax.xlane.f32.xlu1 %v986_v11  ;;  %v980_v12 = vpop.f32.mrf.mxu0 }
 0x3a9   : > { %v2458_v13 = vpop.f32.mrf.mxu0 }
 0x3b8   : > { %1007 = vrot.lane.b32.xlu1 %v3174_v40, %s2910_s29 }
 0x3bc   : > { %1056 = vrot.lane.b32.xlu1 %v3177_v43, %s2910_s29  ;;  %s2922_s29 = smov 24  }
 0x3c0   : > { %1107 = vrot.lane.b32.xlu1 %v3174_v40, %s2911_s22 }
 0x42c   : > { %v985_v14 = vpop.xlane.xlu1 %984 }
 0x42d   : > { %v989_v15 = vsub.f32 %v929_v2, %v985_v14 }
 0x42f   : > { %v991_v16 = vmul.f32 1.442695, %v989_v15 }
 0x430   : > { %v988_v17 = vpop.xlane.xlu1 %987 }
 0x431   : > { %2692 = vpow2.f32 %v991_v16  ;;  %v990_v18 = vsub.f32 %v978_v8, %v988_v17 }
 0x433   : > { %v993_v19 = vmul.f32 1.442695, %v990_v18 }
 0x434   : > { %v1008_v20 = vpop.permute.xlu1 %1007 }
 0x435   : > { %2694 = vpow2.f32 %v993_v19  ;;  %v1014_v21 = vsel %vm1012_vm4, %v1008_v20, 0 }
 0x436   : > { %2460 = vmatpush3.bf16.msra.mxu1 %v1014_v21 }
 0x437   : > { %2471 = vmatprep.subr.bf16.mxu1 %v2906_v34 }
 0x438   : > { %v1057_v22 = vpop.permute.xlu1 %1056 }
 0x439   : > { %v1062_v23 = vsel %vm1012_vm4, %v1057_v22, 0 }
 0x43a   : > { %2466 = vmatpush3.bf16.msra.mxu0 %v1062_v23 }
 0x43b   : > { %2477 = vmatprep.subr.bf16.mxu0 %v2906_v34 }
 0x43c   : > { %v1108_v28 = vpop.permute.xlu1 %1107 }
 0x43d   : > { %v1113_v38 = vsel %vm887_vm3, %v1108_v28, 0 }
 0x43e   : > { %v2693_v24 = vpop.eup %2692 }
 0x43f   : > { %v995_v25 = vsel %vm887_vm3, %v2693_v24, 0.0 }
 0x440   : > { %996 = vadd.xlane.f32.xlu0 %v995_v25 }
 0x442   : > { %v2695_v26 = vpop.eup %2694 }
 0x443   : > { %v998_v27 = vsel %vm887_vm3, %v2695_v26, 0.0 }
 0x444   : > { %999 = vadd.xlane.f32.xlu1 %v998_v27 }
 0x455   : > { %1158 = vrot.lane.b32.xlu1 %v3177_v43, %s2911_s22  ;;  %s3463_s22 = scalar_lea.vmem %s3432_s7, %s3100_s23 }
 0x456   : > { %1105 = vrot.lane.b32.xlu0 %v3183_v50, %s2912_s26 }
 0x459   : > { %1156 = vrot.lane.b32.xlu1 %v3190_v52, %s2912_s26 }
 0x4c9   : > { %v997_v29 = vpop.xlane.xlu0 %996 }
 0x4ca   : > { %2696 = vrcp.f32 %v997_v29 }
 0x4cd   : > { %v1000_v30 = vpop.xlane.xlu1 %999  ;;  %v1106_v45 = vpop.permute.xlu0 %1105 }
 0x4ce   : > { %2698 = vrcp.f32 %v1000_v30 }
 0x4d1   : > { %v1159_v41 = vpop.permute.xlu1 %1158 }
 0x4d2   : > { %v1164_v44 = vsel %vm887_vm3, %v1159_v41, 0 }
 0x4d5   : > { %v1157_v46 = vpop.permute.xlu1 %1156 }
 0x4d7   : > { %v2697_v31 = vpop.eup %2696 }
 0x4d8   : > { %v1003_v32 = vmul.f32 %v2697_v31, %v2693_v24 }
 0x4da   : > { %v1005_v33 = vpack.c.bf16 %v1003_v32, %v1003_v32 }
 0x4db   : > { %v2699_v35 = vpop.eup %2698 }
 0x4dc   : > { %2462 = vmatmul.mubr.msk.bf16.vlgmr.msra.gmra.mxu1 %vm887_vm3, %v1005_v33  ;;  %v1004_v39 = vmul.f32 %v2699_v35, %v2695_v26 }
 0x4dd   : > { %2472 = vmatpush3.bf16.xpose.msra.mxu1 %v1113_v38  ;;  %2473 = vmatprep.mubr.msk.bf16.mxu1 %vm2907_vm1, %v2906_v34 }
 0x4de   : > { %v1006_v42 = vpack.c.bf16 %v1004_v39, %v1004_v39  ;;  %2483 = vmatprep.subr.bf16.mxu1 %v2906_v34 }
 0x4e0   : > { %2468 = vmatmul.mubr.msk.bf16.vlgmr.msra.gmra.mxu0 %vm887_vm3, %v1006_v42 }
 0x4e1   : > { %2478 = vmatpush3.bf16.xpose.msra.mxu0 %v1164_v44  ;;  %2479 = vmatprep.mubr.msk.bf16.mxu0 %vm2907_vm1, %v2906_v34 }
 0x4e2   : > { %2489 = vmatprep.subr.bf16.mxu0 %v2906_v34 }
 0x4e4   : > { %2474 = vmatmul.mubr.msk.bf16.vlgmr.msra.gmra.mxu1 %vm887_vm3, %v1106_v45 }
 0x4e5   : > { %2485 = vmatprep.mubr.msk.bf16.mxu1 %vm2907_vm1, %v2906_v34 }
 0x4e8   : > { %2480 = vmatmul.mubr.msk.bf16.vlgmr.msra.gmra.mxu0 %vm887_vm3, %v1157_v46 }
 0x4e9   : > { %2491 = vmatprep.mubr.msk.bf16.mxu0 %vm2907_vm1, %v2906_v34 }
 0x59c   : > { %v3235_v47 = vpop.f32.mrf.mxu1 }
 0x59e   : > { %v2463_v48 = vpop.f32.mrf.mxu1 }
 0x5a0   : > { %v1053_v49 = vpop.f32.mrf.mxu1  ;;  %v3237_v51 = vpop.f32.mrf.mxu0 }
 0x5a2   : > { %v2464_v53 = vpop.f32.mrf.mxu1  ;;  %v2469_v54 = vpop.f32.mrf.mxu0 }
 0x5a4   : > { %v1101_v55 = vpop.f32.mrf.mxu0  ;;  %v1149_v56 = vpop.f32.mrf.mxu1 }
 0x5a5   : > { %v1150_v57 = vadd.f32 %v1149_v56, %v3199_v63 }
 0x5a6   : > { %v2470_v58 = vpop.f32.mrf.mxu0  ;;  %v2475_v59 = vpop.f32.mrf.mxu1 }
 0x5a7   : > { %v1206_v60 = vsel %vm887_vm3, %v1150_v57, -inf }
 0x5a8   : > { %1207 = vmax.xlane.f32.xlu1 %v1206_v60  ;;  %v1152_v61 = vpop.f32.mrf.mxu1  ;;  %v1200_v62 = vpop.f32.mrf.mxu0 }
 0x5a9   : > { %v1201_v0 = vadd.f32 %v1200_v62, %v3202_v3 }
 0x5aa   : > { %v2476_v1 = vpop.f32.mrf.mxu1  ;;  %v2481_v2 = vpop.f32.mrf.mxu0 }
 0x5ab   : > { %v1209_v4 = vsel %vm887_vm3, %v1201_v0, -inf }
 0x5ac   : > { %1210 = vmax.xlane.f32.xlu0 %v1209_v4  ;;  %v1203_v5 = vpop.f32.mrf.mxu0 }
 0x5ae   : > { %v2482_v6 = vpop.f32.mrf.mxu0 }
 0x5b9   : > { %1230 = vrot.lane.b32.xlu1 %v3174_v40, %s2913_s27 }
 0x5bd   : > { %1328 = vrot.lane.b32.xlu1 %v3174_v40, %s2914_s21 }
 0x5c2   : > { %1278 = vrot.lane.b32.xlu0 %v3177_v43, %s2913_s27 }
 0x5c6   : > { %1326 = vrot.lane.b32.xlu0 %v3183_v50, %s2915_s16 }
 0x631   : > { %v1208_v7 = vpop.xlane.xlu1 %1207 }
 0x632   : > { %v1212_v8 = vsub.f32 %v1150_v57, %v1208_v7 }
 0x634   : > { %v1214_v9 = vmul.f32 1.442695, %v1212_v8 }
 0x635   : > { %v1231_v10 = vpop.permute.xlu1 %1230  ;;  %v1211_v11 = vpop.xlane.xlu0 %1210 }
 0x636   : > { %2700 = vpow2.f32 %v1214_v9  ;;  %v1236_v12 = vsel %vm1012_vm4, %v1231_v10, 0  ;;  %v1213_v13 = vsub.f32 %v1201_v0, %v1211_v11 }
 0x637   : > { %2484 = vmatpush3.bf16.msra.mxu1 %v1236_v12 }
 0x638   : > { %v1216_v14 = vmul.f32 1.442695, %v1213_v13  ;;  %2495 = vmatprep.subr.bf16.mxu1 %v2906_v34 }
 0x639   : > { %v1279_v15 = vpop.permute.xlu0 %1278  ;;  %v1329_v21 = vpop.permute.xlu1 %1328 }
 0x63a   : > { %2702 = vpow2.f32 %v1216_v14  ;;  %v1284_v16 = vsel %vm1012_vm4, %v1279_v15, 0  ;;  %v1334_v28 = vsel %vm887_vm3, %v1329_v21, 0 }
 0x63b   : > { %2490 = vmatpush3.bf16.msra.mxu0 %v1284_v16 }
 0x63c   : > { %2501 = vmatprep.subr.bf16.mxu0 %v2906_v34 }
 0x63d   : > { %v1327_v33 = vpop.permute.xlu0 %1326 }
 0x643   : > { %v2701_v17 = vpop.eup %2700 }
 0x644   : > { %v1218_v18 = vsel %vm887_vm3, %v2701_v17, 0.0 }
 0x645   : > { %1219 = vadd.xlane.f32.xlu1 %v1218_v18 }
 0x647   : > { %v2703_v19 = vpop.eup %2702 }
 0x648   : > { %v1221_v20 = vsel %vm887_vm3, %v2703_v19, 0.0 }
 0x649   : > { %1222 = vadd.xlane.f32.xlu1 %v1221_v20 }
 0x65a   : > { %1378 = vrot.lane.b32.xlu1 %v3177_v43, %s2914_s21  ;;  %s3464_s21 = scalar_lea.vmem %s3433_s8, %s3100_s23 }
 0x65e   : > { %1376 = vrot.lane.b32.xlu1 %v3190_v52, %s2915_s16 }
 0x6ce   : > { %v1220_v22 = vpop.xlane.xlu1 %1219 }
 0x6cf   : > { %2704 = vrcp.f32 %v1220_v22 }
 0x6d2   : > { %v1223_v23 = vpop.xlane.xlu1 %1222 }
 0x6d3   : > { %2706 = vrcp.f32 %v1223_v23 }
 0x6d6   : > { %v1379_v30 = vpop.permute.xlu1 %1378 }
 0x6d7   : > { %v1384_v32 = vsel %vm887_vm3, %v1379_v30, 0 }
 0x6da   : > { %v1377_v35 = vpop.permute.xlu1 %1376 }
 0x6dc   : > { %v2705_v24 = vpop.eup %2704 }
 0x6dd   : > { %v1226_v25 = vmul.f32 %v2705_v24, %v2701_v17 }
 0x6df   : > { %v1228_v26 = vpack.c.bf16 %v1226_v25, %v1226_v25 }
 0x6e0   : > { %v2707_v27 = vpop.eup %2706 }
 0x6e1   : > { %2486 = vmatmul.mubr.msk.bf16.vlgmr.msra.gmra.mxu1 %vm887_vm3, %v1228_v26  ;;  %v1227_v29 = vmul.f32 %v2707_v27, %v2703_v19 }
 0x6e2   : > { %2496 = vmatpush3.bf16.xpose.msra.mxu1 %v1334_v28  ;;  %2497 = vmatprep.mubr.msk.bf16.mxu1 %vm2907_vm1, %v2906_v34 }
 0x6e3   : > { %v1229_v31 = vpack.c.bf16 %v1227_v29, %v1227_v29  ;;  %2507 = vmatprep.subr.bf16.mxu1 %v2906_v34 }
 0x6e5   : > { %2492 = vmatmul.mubr.msk.bf16.vlgmr.msra.gmra.mxu0 %vm887_vm3, %v1229_v31 }
 0x6e6   : > { %2502 = vmatpush3.bf16.xpose.msra.mxu0 %v1384_v32  ;;  %2503 = vmatprep.mubr.msk.bf16.mxu0 %vm2907_vm1, %v2906_v34 }
 0x6e7   : > { %2513 = vmatprep.subr.bf16.mxu0 %v2906_v34 }
 0x6e9   : > { %2498 = vmatmul.mubr.msk.bf16.vlgmr.msra.gmra.mxu1 %vm887_vm3, %v1327_v33 }
 0x6ea   : > { %2509 = vmatprep.mubr.msk.bf16.mxu1 %vm2907_vm1, %v2906_v34 }
 0x6ed   : > { %2504 = vmatmul.mubr.msk.bf16.vlgmr.msra.gmra.mxu0 %vm887_vm3, %v1377_v35 }
 0x6ee   : > { %2515 = vmatprep.mubr.msk.bf16.mxu0 %vm2907_vm1, %v2906_v34 }
 0x7a1   : > { %v3271_v38 = vpop.f32.mrf.mxu1 }
 0x7a3   : > { %v2487_v39 = vpop.f32.mrf.mxu1 }
 0x7a5   : > { %v1275_v41 = vpop.f32.mrf.mxu1  ;;  %v3273_v42 = vpop.f32.mrf.mxu0 }
 0x7a6   : > { %v2667_v44 = vpack.i.bf16 %v3273_v42, %v3271_v38 }
 0x7a7   : > { %v2488_v45 = vpop.f32.mrf.mxu1  ;;  %v2493_v46 = vpop.f32.mrf.mxu0 }
 0x7a9   : > { %v1323_v48 = vpop.f32.mrf.mxu0  ;;  %v1370_v49 = vpop.f32.mrf.mxu1 }
 0x7aa   : > { %v1371_v53 = vadd.f32 %v1370_v49, %v3199_v63 }
 0x7ab   : > { %v2494_v54 = vpop.f32.mrf.mxu0  ;;  %v2499_v55 = vpop.f32.mrf.mxu1 }
 0x7ac   : > { %v1426_v56 = vsel %vm887_vm3, %v1371_v53, -inf }
 0x7ad   : > { %1427 = vmax.xlane.f32.xlu0 %v1426_v56  ;;  %v1373_v57 = vpop.f32.mrf.mxu1  ;;  %v1420_v58 = vpop.f32.mrf.mxu0 }
 0x7ae   : > { %v1421_v59 = vadd.f32 %v1420_v58, %v3202_v3 }
 0x7af   : > { %v2500_v60 = vpop.f32.mrf.mxu1  ;;  %v2505_v61 = vpop.f32.mrf.mxu0 }
 0x7b0   : > { %v1429_v62 = vsel %vm887_vm3, %v1421_v59, -inf }
 0x7b1   : > { %1430 = vmax.xlane.f32.xlu1 %v1429_v62  ;;  %v1423_v0 = vpop.f32.mrf.mxu0 }
 0x7b3   : > { %v2506_v1 = vpop.f32.mrf.mxu0 }
 0x7c2   : > { %1450 = vrot.lane.b32.xlu1 %v3174_v40, %s2916_s19 }
 0x7c6   : > { %1548 = vrot.lane.b32.xlu1 %v3174_v40, %s2917_s3 }
 0x7ca   : > { %1598 = vrot.lane.b32.xlu1 %v3177_v43, %s2917_s3 }
 0x7ce   : > { %1596 = vrot.lane.b32.xlu1 %v3190_v52, %s2918_s25 }
 0x836   : > { %v1428_v2 = vpop.xlane.xlu0 %1427 }
 0x837   : > { %v1432_v4 = vsub.f32 %v1371_v53, %v1428_v2 }
 0x839   : > { %v1434_v5 = vmul.f32 1.442695, %v1432_v4 }
 0x83a   : > { %v1431_v6 = vpop.xlane.xlu1 %1430 }
 0x83b   : > { %2708 = vpow2.f32 %v1434_v5  ;;  %v1433_v7 = vsub.f32 %v1421_v59, %v1431_v6 }
 0x83d   : > { %v1436_v8 = vmul.f32 1.442695, %v1433_v7 }
 0x83e   : > { %v1451_v9 = vpop.permute.xlu1 %1450 }
 0x83f   : > { %2710 = vpow2.f32 %v1436_v8  ;;  %v1456_v10 = vsel %vm1012_vm4, %v1451_v9, 0 }
 0x840   : > { %2508 = vmatpush3.bf16.msra.mxu1 %v1456_v10 }
 0x841   : > { %2519 = vmatprep.subr.bf16.mxu1 %v2906_v34 }
 0x842   : > { %v1549_v19 = vpop.permute.xlu1 %1548 }
 0x843   : > { %v1554_v23 = vsel %vm887_vm3, %v1549_v19, 0 }
 0x846   : > { %v1599_v24 = vpop.permute.xlu1 %1598 }
 0x847   : > { %v1604_v26 = vsel %vm887_vm3, %v1599_v24, 0 }
 0x848   : > { %v2709_v11 = vpop.eup %2708 }
 0x849   : > { %v1438_v12 = vsel %vm887_vm3, %v2709_v11, 0.0 }
 0x84a   : > { %1439 = vadd.xlane.f32.xlu0 %v1438_v12  ;;  %v1597_v28 = vpop.permute.xlu1 %1596 }
 0x84c   : > { %v2711_v13 = vpop.eup %2710 }
 0x84d   : > { %v1441_v52 = vsel %vm887_vm3, %v2711_v13, 0.0 }
 0x84e   : > { %1442 = vadd.xlane.f32.xlu0 %v1441_v52 }
 0x864   : > { %1498 = vrot.lane.b32.xlu0 %v3177_v43, %s2916_s19 }
 0x868   : > { %1546 = vrot.lane.b32.xlu0 %v3183_v50, %s2918_s25 }
 0x8d3   : > { %v1440_v14 = vpop.xlane.xlu0 %1439 }
 0x8d4   : > { %2712 = vrcp.f32 %v1440_v14  ;;  %v2684_v14 = vld [vmem:[%s3115_s1 + $0x8] sm:$0xff]  }
 0x8d7   : > { %v1443_v15 = vpop.xlane.xlu0 %1442 }
 0x8d8   : > { %2714 = vrcp.f32 %v1443_v15  ;;  %v2685_v15 = vld [vmem:[%s3115_s1] sm:$0xff]  }
 0x8db   : > { %v1499_v16 = vpop.permute.xlu0 %1498 }
 0x8dc   : > { %v1504_v17 = vsel %vm1012_vm4, %v1499_v16, 0 }
 0x8dd   : > { %2514 = vmatpush3.bf16.msra.mxu0 %v1504_v17 }
 0x8de   : > { %2525 = vmatprep.subr.bf16.mxu0 %v2906_v34 }
 0x8df   : > { %v1547_v27 = vpop.permute.xlu0 %1546 }
 0x8e1   : > { %v2713_v18 = vpop.eup %2712 }
 0x8e2   : > { %v1446_v20 = vmul.f32 %v2713_v18, %v2709_v11 }
 0x8e4   : > { %v1448_v21 = vpack.c.bf16 %v1446_v20, %v1446_v20 }
 0x8e5   : > { %v2715_v22 = vpop.eup %2714 }
 0x8e6   : > { %2510 = vmatmul.mubr.msk.bf16.vlgmr.msra.gmra.mxu1 %vm887_vm3, %v1448_v21  ;;  %v1447_v50 = vmul.f32 %v2715_v22, %v2711_v13 }
 0x8e7   : > { %2520 = vmatpush3.bf16.xpose.msra.mxu1 %v1554_v23  ;;  %2521 = vmatprep.mubr.msk.bf16.mxu1 %vm2907_vm1, %v2906_v34 }
 0x8e8   : > { %v1449_v25 = vpack.c.bf16 %v1447_v50, %v1447_v50  ;;  %2531 = vmatprep.subr.bf16.mxu1 %v2906_v34 }
 0x8ea   : > { %2516 = vmatmul.mubr.msk.bf16.vlgmr.msra.gmra.mxu0 %vm887_vm3, %v1449_v25 }
 0x8eb   : > { %2526 = vmatpush3.bf16.xpose.msra.mxu0 %v1604_v26  ;;  %2527 = vmatprep.mubr.msk.bf16.mxu0 %vm2907_vm1, %v2906_v34 }
 0x8ec   : > { %2537 = vmatprep.subr.bf16.mxu0 %v2906_v34 }
 0x8ee   : > { %2522 = vmatmul.mubr.msk.bf16.vlgmr.msra.gmra.mxu1 %vm887_vm3, %v1547_v27 }
 0x8ef   : > { %2533 = vmatprep.mubr.msk.bf16.mxu1 %vm2907_vm1, %v2906_v34 }
 0x8f2   : > { %2528 = vmatmul.mubr.msk.bf16.vlgmr.msra.gmra.mxu0 %vm887_vm3, %v1597_v28 }
 0x8f3   : > { %2539 = vmatprep.mubr.msk.bf16.mxu0 %vm2907_vm1, %v2906_v34 }
 0x9a6   : > { %v1492_v29 = vpop.f32.mrf.mxu1 }
 0x9a8   : > { %v2511_v30 = vpop.f32.mrf.mxu1 }
 0x9aa   : > { %v1495_v31 = vpop.f32.mrf.mxu1  ;;  %v1540_v32 = vpop.f32.mrf.mxu0 }
 0x9ac   : > { %v2512_v33 = vpop.f32.mrf.mxu1  ;;  %v2517_v35 = vpop.f32.mrf.mxu0 }
 0x9ae   : > { %v1543_v39 = vpop.f32.mrf.mxu0  ;;  %v1590_v41 = vpop.f32.mrf.mxu1 }
 0x9af   : > { %v1591_v45 = vadd.f32 %v1590_v41, %v3199_v63  ;;  %v2672_v63 = vpack.i.bf16 %v1540_v32, %v1492_v29 }
 0x9b0   : > { %v2518_v46 = vpop.f32.mrf.mxu0  ;;  %v2523_v48 = vpop.f32.mrf.mxu1 }
 0x9b1   : > { %v1646_v49 = vsel %vm887_vm3, %v1591_v45, -inf }
 0x9b2   : > { %1647 = vmax.xlane.f32.xlu0 %v1646_v49  ;;  %v1593_v53 = vpop.f32.mrf.mxu1  ;;  %v1640_v54 = vpop.f32.mrf.mxu0 }
 0x9b3   : > { %v1641_v55 = vadd.f32 %v1640_v54, %v3202_v3 }
 0x9b4   : > { %v2524_v56 = vpop.f32.mrf.mxu1  ;;  %v2529_v57 = vpop.f32.mrf.mxu0 }
 0x9b5   : > { %v1649_v58 = vsel %vm887_vm3, %v1641_v55, -inf }
 0x9b6   : > { %1650 = vmax.xlane.f32.xlu1 %v1649_v58  ;;  %v1643_v59 = vpop.f32.mrf.mxu0 }
 0x9b8   : > { %v2530_v60 = vpop.f32.mrf.mxu0 }
 0x9c7   : > { %1670 = vrot.lane.b32.xlu1 %v3174_v40, %s2919_s5 }
 0x9cb   : > { %2668 = vrot.lane.b32.xlu1 %v2667_v44, %s2920_s6 }
 0x9cf   : > { %2673 = vrot.lane.b32.xlu1 %v2672_v63, %s2921_s28 }
 0xa3b   : > { %v1648_v3 = vpop.xlane.xlu0 %1647 }
 0xa3c   : > { %v1652_v61 = vsub.f32 %v1591_v45, %v1648_v3 }
 0xa3e   : > { %v1654_v62 = vmul.f32 1.442695, %v1652_v61 }
 0xa3f   : > { %v1651_v0 = vpop.xlane.xlu1 %1650 }
 0xa40   : > { %2716 = vpow2.f32 %v1654_v62  ;;  %v1653_v1 = vsub.f32 %v1641_v55, %v1651_v0 }
 0xa42   : > { %v1656_v2 = vmul.f32 1.442695, %v1653_v1  ;;  %v2686_v1 = vld [vmem:[%s3124_s4 + $0x8] sm:$0xff]  }
 0xa43   : > { %v1671_v4 = vpop.permute.xlu1 %1670 }
 0xa44   : > { %2718 = vpow2.f32 %v1656_v2  ;;  %v1676_v40 = vsel %vm1012_vm4, %v1671_v4, 0  ;;  %v2687_v2 = vld [vmem:[%s3124_s4] sm:$0xff]   ;;  %v2688_v4 = vld [vmem:[%s3134_s30 + $0x18] sm:$0xff]  }
 0xa45   : > { %2532 = vmatpush3.bf16.msra.mxu1 %v1676_v40 }
 0xa46   : > { %2543 = vmatprep.subr.bf16.mxu1 %v2906_v34 }
 0xa47   : > { %v2669_v24 = vpop.permute.xlu1 %2668 }
 0xa48   : > { %v2671_v26 = vunpack.i.h.bf16 %v2669_v24  ;;  %v2670_v27 = vunpack.i.l.bf16 %v2669_v24 }
 0xa4a   : > { %v1791_v31 = vsel %vm887_vm3, %v3237_v51, %v2671_v26  ;;  %v1790_v32 = vsel %vm887_vm3, %v3235_v47, %v2670_v27 }
 0xa4b   : > { %v2674_v25 = vpop.permute.xlu1 %2673 }
 0xa4c   : > { %v2676_v28 = vunpack.i.h.bf16 %v2674_v25  ;;  %v2675_v29 = vunpack.i.l.bf16 %v2674_v25 }
 0xa4d   : > { %v2717_v5 = vpop.eup %2716 }
 0xa4e   : > { %v1658_v38 = vsel %vm887_vm3, %v2717_v5, 0.0  ;;  %v1793_v39 = vsel %vm1792_vm5, %v1790_v32, %v2675_v29  ;;  %v1794_v41 = vsel %vm1792_vm5, %v1791_v31, %v2676_v28 }
 0xa4f   : > { %1659 = vadd.xlane.f32.xlu0 %v1658_v38 }
 0xa51   : > { %v2719_v42 = vpop.eup %2718 }
 0xa52   : > { %v1661_v44 = vsel %vm887_vm3, %v2719_v42, 0.0 }
 0xa53   : > { %1662 = vadd.xlane.f32.xlu0 %v1661_v44 }
 0xa69   : > { %1718 = vrot.lane.b32.xlu0 %v3177_v43, %s2919_s5 }
 0xad8   : > { %v1660_v6 = vpop.xlane.xlu0 %1659 }
 0xad9   : > { %2720 = vrcp.f32 %v1660_v6 }
 0xadc   : > { %v1663_v7 = vpop.xlane.xlu0 %1662 }
 0xadd   : > { %2722 = vrcp.f32 %v1663_v7 }
 0xae0   : > { %v1719_v8 = vpop.permute.xlu0 %1718 }
 0xae1   : > { %v1724_v9 = vsel %vm1012_vm4, %v1719_v8, 0 }
 0xae2   : > { %2538 = vmatpush3.bf16.msra.mxu0 %v1724_v9  ;;  %v2370_v9 = vld [vmem:[%s3463_s22] ss:$0 sm:$0xff] }
 0xae3   : > { %2551 = vmatprep.subr.bf16.mxu0 %v2906_v34 }
 0xae6   : > { %v2721_v10 = vpop.eup %2720 }
 0xae7   : > { %v1666_v11 = vmul.f32 %v2721_v10, %v2717_v5 }
 0xae9   : > { %v1668_v12 = vpack.c.bf16 %v1666_v11, %v1666_v11 }
 0xaea   : > { %v2723_v13 = vpop.eup %2722 }
 0xaeb   : > { %2534 = vmatmul.mubr.msk.bf16.vlgmr.msra.gmra.mxu1 %vm887_vm3, %v1668_v12  ;;  %v1667_v52 = vmul.f32 %v2723_v13, %v2719_v42  ;;  %v2371_v13 = vld [vmem:[%s3464_s21] ss:$0 sm:$0xff] }
 0xaec   : > { %2547 = vmatprep.mubr.msk.bf16.mxu1 %vm2907_vm1, %v2906_v34  ;;  %2544 = vmatpush3.bf16.msra.mxu1 %v2684_v14 }
 0xaed   : > { %v1669_v43 = vpack.c.bf16 %v1667_v52, %v1667_v52  ;;  %2545 = vmatprep.subr.bf16.mxu1 %v2906_v34 }
 0xaef   : > { %2540 = vmatmul.mubr.msk.bf16.vlgmr.msra.gmra.mxu0 %vm887_vm3, %v1669_v43 }
 0xaf0   : > { %2555 = vmatprep.mubr.msk.bf16.mxu0 %vm2907_vm1, %v2906_v34  ;;  %2546 = vmatpush3.bf16.msra.mxu1 %v2685_v15 }
 0xaf1   : > { %2559 = vmatprep.subr.bf16.mxu1 %v2906_v34  ;;  %2552 = vmatpush3.bf16.msra.mxu0 %v2686_v1 }
 0xaf2   : > { %2553 = vmatprep.subr.bf16.mxu0 %v2906_v34 }
 0xaf5   : > { %2554 = vmatpush3.bf16.msra.mxu0 %v2687_v2 }
 0xbab   : > { %v1712_v16 = vpop.f32.mrf.mxu1 }
 0xbad   : > { %v2535_v17 = vpop.f32.mrf.mxu1 }
 0xbae   : > { %v2690_v17 = vld [vmem:[%s3134_s30 + $0x8] sm:$0xff]  }
 0xbaf   : > { %v1715_v18 = vpop.f32.mrf.mxu1  ;;  %v1760_v19 = vpop.f32.mrf.mxu0 }
 0xbb0   : > { %v2677_v20 = vpack.i.bf16 %v1760_v19, %v1712_v16  ;;  %v2689_v16 = vld [vmem:[%s3134_s30 + $0x10] sm:$0xff]   ;;  %v2691_v18 = vld [vmem:[%s3134_s30] sm:$0xff]  }
 0xbb1   : > { %v2536_v21 = vpop.f32.mrf.mxu1  ;;  %v2541_v22 = vpop.f32.mrf.mxu0  ;;  %v2372_v19 = vld [vmem:[%s706_s24] ss:$0 sm:$0xff] }
 0xbb2   : > { %2678 = vrot.lane.b32.xlu0 %v2677_v20, %s2922_s29 }
 0xbb3   : > { %v1763_v23 = vpop.f32.mrf.mxu0 }
 0xbb5   : > { %v2542_v50 = vpop.f32.mrf.mxu0 }
 0xc24   : > { %v2679_v30 = vpop.permute.xlu0 %2678 }
 0xc25   : > { %v2681_v33 = vunpack.i.h.bf16 %v2679_v30  ;;  %v2680_v35 = vunpack.i.l.bf16 %v2679_v30 }
 0xc27   : > { %v1797_v45 = vsel %vm1795_vm6, %v1794_v41, %v2681_v33  ;;  %v1796_v46 = vsel %vm1795_vm6, %v1793_v39, %v2680_v35 }
 0xc28   : > { %v1798_v48 = vpack.c.bf16 %v1797_v45, %v1796_v46 }
 0xc2a   : > { %2548 = vmatmul.mubr.msk.bf16.vlgmr.msra.gmra.mxu1 %vm799_vm2, %v1798_v48 }
 0xc2b   : > { %2567 = vmatprep.mubr.msk.bf16.mxu1 %vm2907_vm1, %v2906_v34  ;;  %2560 = vmatpush3.bf16.msra.mxu1 %v2688_v4 }
 0xc2c   : > { %2561 = vmatprep.subr.bf16.mxu1 %v2906_v34 }
 0xc2f   : > { %2562 = vmatpush3.bf16.msra.mxu1 %v2689_v16 }
 0xc30   : > { %2563 = vmatprep.subr.bf16.mxu1 %v2906_v34 }
 0xc33   : > { %2564 = vmatpush3.bf16.msra.mxu1 %v2690_v17 }
 0xc34   : > { %2565 = vmatprep.subr.bf16.mxu1 %v2906_v34  ;;  %v2376_v34 = vld [vmem:[%s714_s17] ss:$0 sm:$0xff] }
 0xc37   : > { %2566 = vmatpush3.bf16.msra.mxu1 %v2691_v18 }
 0xcea   : > { %v1852_v49 = vpop.f32.mrf.mxu1 }
 0xceb   : > { %v1853_v53 = vadd.f32 %v1852_v49, %v3161_v36 }
 0xcec   : > { %v2549_v54 = vpop.f32.mrf.mxu1 }
 0xced   : > { %v1861_v51 = vsel %vm799_vm2, %v1853_v53, 0.0 }
 0xcee   : > { %1862 = vadd.xlane.f32.xlu1 %v1861_v51  ;;  %v1855_v47 = vpop.f32.mrf.mxu1 }
 0xcef   : > { %v1856_v55 = vadd.f32 %v1855_v47, %v3163_v37 }
 0xcf0   : > { %v2550_v56 = vpop.f32.mrf.mxu1 }
 0xcf1   : > { %v1864_v57 = vsel %vm799_vm2, %v1856_v55, 0.0 }
 0xcf2   : > { %1865 = vadd.xlane.f32.xlu0 %v1864_v57 }
 0xd77   : > { %v1863_v58 = vpop.xlane.xlu1 %1862 }
 0xd78   : > { %v1868_v59 = vmul.f32 0.03125, %v1863_v58 }
 0xd7a   : > { %v1870_v60 = vsub.f32 %v1853_v53, %v1868_v59 }
 0xd7b   : > { %v1866_v63 = vpop.xlane.xlu0 %1865 }
 0xd7c   : > { %v1869_v3 = vmul.f32 0.03125, %v1866_v63  ;;  %v1872_v36 = vmul.f32 %v1870_v60, %v1870_v60 }
 0xd7e   : > { %v1871_v61 = vsub.f32 %v1856_v55, %v1869_v3  ;;  %v1874_v62 = vsel %vm799_vm2, %v1872_v36, 0.0 }
 0xd7f   : > { %1875 = vadd.xlane.f32.xlu0 %v1874_v62  ;;  %v2382_v62 = vld [vmem:[%s717_s0] ss:$0 sm:$0xff] }
 0xd80   : > { %v1873_v0 = vmul.f32 %v1871_v61, %v1871_v61 }
 0xd82   : > { %v1877_v37 = vsel %vm799_vm2, %v1873_v0, 0.0 }
 0xd83   : > { %1878 = vadd.xlane.f32.xlu1 %v1877_v37  ;;  %v2383_v37 = vld [vmem:[%s720_s9] ss:$0 sm:$0xff] }
 0xe08   : > { %v1876_v40 = vpop.xlane.xlu0 %1875 }
 0xe09   : > { %v1880_v5 = vmul.f32 0.03125, %v1876_v40 }
 0xe0b   : > { %v1882_v38 = vadd.f32 1e-06, %v1880_v5 }
 0xe0c   : > { %v1879_v42 = vpop.xlane.xlu1 %1878 }
 0xe0d   : > { %2724 = vrsqrt.f32 %v1882_v38  ;;  %v1881_v44 = vmul.f32 0.03125, %v1879_v42 }
 0xe0f   : > { %v1883_v6 = vadd.f32 1e-06, %v1881_v44 }
 0xe11   : > { %2726 = vrsqrt.f32 %v1883_v6 }
 0xe1a   : > { %v2725_v7 = vpop.eup %2724 }
 0xe1b   : > { %v1886_v8 = vmul.f32 %v2725_v7, %v1870_v60 }
 0xe1d   : > { %v1894_v12 = vmul.f32 %v2370_v9, %v1886_v8 }
 0xe1e   : > { %v2727_v10 = vpop.eup %2726 }
 0xe1f   : > { %v1887_v11 = vmul.f32 %v2727_v10, %v1871_v61  ;;  %v1902_v43 = vadd.f32 %v2371_v13, %v1894_v12 }
 0xe21   : > { %v1895_v52 = vmul.f32 %v2370_v9, %v1887_v11 }
 0xe23   : > { %v1903_v14 = vadd.f32 %v2371_v13, %v1895_v52 }
 0xe25   : > { %v1904_v15 = vpack.c.bf16 %v1903_v14, %v1902_v43 }
 0xe27   : > { %2556 = vmatmul.mubr.msk.bf16.vlgmr.msra.gmra.mxu0 %vm799_vm2, %v1904_v15 }
 0xee7   : > { %v1965_v20 = vpop.f32.mrf.mxu0 }
 0xee8   : > { %v1966_v22 = vadd.f32 %v2372_v19, %v1965_v20 }
 0xee9   : > { %v2557_v21 = vpop.f32.mrf.mxu0 }
 0xeea   : > { %v1972_v25 = vmax.f32 %v1966_v22, 0.0 }
 0xeeb   : > { %v1968_v23 = vpop.f32.mrf.mxu0 }
 0xeec   : > { %v1969_v50 = vadd.f32 %v2372_v19, %v1968_v23 }
 0xeed   : > { %v2558_v24 = vpop.f32.mrf.mxu0 }
 0xeee   : > { %v1973_v26 = vmax.f32 %v1969_v50, 0.0 }
 0xef0   : > { %v1974_v27 = vpack.c.bf16 %v1973_v26, %v1972_v25 }
 0xef2   : > { %2568 = vmatmul.mubr.msk.bf16.vlgmr.msra.gmra.mxu1 %vm2014_vm7, %v1974_v27 }
 0xfb2   : > { %v2052_v28 = vpop.f32.mrf.mxu1 }
 0xfb3   : > { %v2053_v29 = vadd.f32 %v2376_v34, %v2052_v28 }
 0xfb4   : > { %v2569_v30 = vpop.f32.mrf.mxu1 }
 0xfb5   : > { %v2059_v31 = vadd.f32 %v2053_v29, %v1902_v43 }
 0xfb6   : > { %v2055_v32 = vpop.f32.mrf.mxu1 }
 0xfb7   : > { %v2056_v33 = vadd.f32 %v2376_v34, %v2055_v32  ;;  %v2063_v35 = vsel %vm799_vm2, %v2059_v31, 0.0 }
 0xfb8   : > { %2064 = vadd.xlane.f32.xlu0 %v2063_v35  ;;  %v2570_v39 = vpop.f32.mrf.mxu1 }
 0xfb9   : > { %v2060_v41 = vadd.f32 %v2056_v33, %v1903_v14 }
 0xfbb   : > { %v2066_v45 = vsel %vm799_vm2, %v2060_v41, 0.0 }
 0xfbc   : > { %2067 = vadd.xlane.f32.xlu1 %v2066_v45 }
0x1041   : > { %v2065_v46 = vpop.xlane.xlu0 %2064 }
0x1042   : > { %v2069_v48 = vmul.f32 0.03125, %v2065_v46 }
0x1044   : > { %v2071_v49 = vsub.f32 %v2059_v31, %v2069_v48 }
0x1045   : > { %v2068_v53 = vpop.xlane.xlu1 %2067 }
0x1046   : > { %v2070_v54 = vmul.f32 0.03125, %v2068_v53  ;;  %v2073_v51 = vmul.f32 %v2071_v49, %v2071_v49 }
0x1048   : > { %v2072_v47 = vsub.f32 %v2060_v41, %v2070_v54  ;;  %v2075_v55 = vsel %vm799_vm2, %v2073_v51, 0.0 }
0x1049   : > { %2076 = vadd.xlane.f32.xlu0 %v2075_v55 }
0x104a   : > { %v2074_v56 = vmul.f32 %v2072_v47, %v2072_v47 }
0x104c   : > { %v2078_v57 = vsel %vm799_vm2, %v2074_v56, 0.0 }
0x104d   : > { %2079 = vadd.xlane.f32.xlu1 %v2078_v57 }
0x10d2   : > { %v2077_v58 = vpop.xlane.xlu0 %2076 }
0x10d3   : > { %v2081_v59 = vmul.f32 0.03125, %v2077_v58 }
0x10d5   : > { %v2083_v60 = vadd.f32 1e-06, %v2081_v59 }
0x10d6   : > { %v2080_v63 = vpop.xlane.xlu1 %2079 }
0x10d7   : > { %2728 = vrsqrt.f32 %v2083_v60  ;;  %v2082_v3 = vmul.f32 0.03125, %v2080_v63 }
0x10d9   : > { %v2084_v36 = vadd.f32 1e-06, %v2082_v3 }
0x10db   : > { %2730 = vrsqrt.f32 %v2084_v36 }
0x10e4   : > { %v2729_v61 = vpop.eup %2728 }
0x10e5   : > { %v2087_v0 = vmul.f32 %v2729_v61, %v2071_v49 }
0x10e7   : > { %v2095_v1 = vmul.f32 %v2382_v62, %v2087_v0 }
0x10e8   : > { %v2731_v2 = vpop.eup %2730 }
0x10e9   : > { %v2103_v4 = vadd.f32 %v2383_v37, %v2095_v1  ;;  %v2088_v40 = vmul.f32 %v2731_v2, %v2072_v47 }
0x10eb   : > { %2105 = vst.msk [vmem:[#allocation2] sm:$0xff] %vm799_vm2, %v2103_v4  ;;  %v2096_v5 = vmul.f32 %v2382_v62, %v2088_v40  ;;  %2110 = sbr.rel (%p2384_p5) target bundleno = 4337 (0x10f1), region = 104 }
0x10ed   : > { %v2104_v38 = vadd.f32 %v2383_v37, %v2096_v5 }
0x10ef   : > { %2106 = vst.msk [vmem:[#allocation2 + $0x8] sm:$0xff] %vm799_vm2, %v2104_v38 }
0x10f0   : > { %2111 = vst.msk [vmem:[#allocation11] sm:$0xff] %vm799_vm2, %v2103_v4  ;;  %2112 = vst.msk [vmem:[#allocation11 + $0x8] sm:$0xff] %vm799_vm2, %v2104_v38 }
0x10f1 PF: > { %s3465_s9 = sadd.s32 4294967295, %s2898_s20   ;;  %s2923_s0 = smov [#allocation11]  }
0x10f2   : > { %p3400_p7 = scmp.eq.s32.totalorder %s3465_s9, 1  ;;  %s2122_s28 = sshll.u32 %s2923_s0, 4  ;;  %s2123_s28 = int_to_ptr.vmem [resolvable:$true] %s2122_s28 }
0x10f3   : > { %s2836_s29 = scalar_lea.vmem %s2123_s28, 256  ;;  %p2843_p10 = scmp.lt.s32.totalorder %s2123_s28, %s2123_s28 }
0x10f4   : > { %p2837_p4 = scmp.ne.s32.totalorder %s2123_s28, %s2836_s29  ;;  %p2844_p11 = scmp.lt.s32.totalorder %s2836_s29, %s2836_s29 }
0x10f6   : > { %p2838_p8 = pnand %p2837_p4, %p3400_p7  ;;  %p2845_p12 = por %p2844_p11, %p2843_p10 }
0x10f8   : > { %p2839_p9 = pneg %p2838_p8 }
0x10fa   : > { %p2846_p6 = pnand %p2845_p12, %p2839_p9 }
0x10fc   : > { %2849 = shalt.err (!%p2846_p6)
}
0x10fd   : > { %s2924_s18 = smov 128  }
0x10fe   : > { %2588 = dma.vmem_to_hbm [thread:$0]  (%p3400_p7), %s2123_s28, 256, %s3440_s15, [#allocation5], %s2924_s18, %s2924_s18, %s2920_s6  }
0x10ff   : > { %2885 = dma.done.wait (%p3400_p7), [#allocation5], 256  }
0x1100   : > { %2887 = vsyncadd (%p3400_p7), [#allocation5], 4294967040 }
0x1101 PF: > { %s29_s20 = sadd.s32 1, %s2898_s20   ;;  %s3467_s18 = sld [smem:[#allocation16_spill]] }
0x1102   : > { %p26_p13 = scmp.ge.s32.totalorder %s29_s20, 4   ;;  %s3468_s19 = sld [smem:[#allocation17_spill]] }
0x1104   :  { %28 = sbr.rel (!%p26_p13) target bundleno = 13 (0xd), region = 164 }
0x1109   :  { %2138 = vsyncpa [#allocation4], 1 }
0x110a   :  { %2140 = vsyncpa [#allocation4 + $0x1], 1 }
0x110b   :  { %2141 = vsyncpa [#allocation7], 1 }
0x110c   :  { %2142 = vsyncpa [#allocation10], 1 }
0x110d   :  { %2143 = vsyncpa [#allocation5], 1 }
0x110e   :  { %2145 = vsyncpa [#allocation5 + $0x1], 1 }

</bundles_post_ra>
